<compile_context>
chip_gen: v7x
topology: tpu7x:2x2x1
jax: 0.10.0
libtpu: 0.0.40
codegen_flags: <defaults>
</compile_context>

<pallas_src>
import numpy as np
import jax
import jax.numpy as jnp
from jax import lax
from jax.experimental import pallas as pl
from jax.experimental.pallas import tpu as pltpu

LANE = 128


# ----------------------------- Pallas kernels ------------------------------

def _conv_relu_pool_kernel(p_ref, w_ref, b_ref, pool_ref, o_ref):
    """One image: relu(patches @ W + b) followed by 2x2 avg-pool (pool @ h)."""
    h = jnp.dot(p_ref[...], w_ref[...], preferred_element_type=jnp.float32)
    h = jnp.maximum(h + b_ref[...], 0.0)
    o_ref[...] = jnp.dot(pool_ref[...], h, preferred_element_type=jnp.float32)


def conv_relu_pool(patches, wmat, bias, pool):
    """patches: (N, S, K); wmat: (K, 128); bias: (1, 128); pool: (P, S).

    Returns (N, P, 128): per-image fused conv-matmul + bias + ReLU + avg-pool.
    One grid step per image; weights/pool use constant index maps (resident).
    """
    N, S, K = patches.shape
    P = pool.shape[0]
    C = wmat.shape[1]
    return pl.pallas_call(
        _conv_relu_pool_kernel,
        out_shape=jax.ShapeDtypeStruct((N, P, C), jnp.float32),
        grid_spec=pltpu.PrefetchScalarGridSpec(
            num_scalar_prefetch=0,
            grid=(N,),
            in_specs=[
                pl.BlockSpec((None, S, K), lambda n: (n, 0, 0)),   # patches
                pl.BlockSpec((K, C), lambda n: (0, 0)),            # weights
                pl.BlockSpec((1, C), lambda n: (0, 0)),            # bias row
                pl.BlockSpec((P, S), lambda n: (0, 0)),            # pool matrix
            ],
            out_specs=pl.BlockSpec((None, P, C), lambda n: (n, 0, 0)),
        ),
        compiler_params=pltpu.CompilerParams(
            dimension_semantics=("parallel",)),
    )(patches, wmat, bias, pool)


def _fc_stack_kernel(x_ref, w1_ref, b1_ref, w2_ref, b2_ref, w3_ref, b3_ref,
                     o_ref):
    """fc1 -> ReLU -> fc2 -> ReLU -> fc3, all weights resident in VMEM."""
    h = jnp.dot(x_ref[...], w1_ref[...],
                preferred_element_type=jnp.float32) + b1_ref[...]
    h = jnp.maximum(h, 0.0)
    h = jnp.dot(h, w2_ref[...],
                preferred_element_type=jnp.float32) + b2_ref[...]
    h = jnp.maximum(h, 0.0)
    o_ref[...] = jnp.dot(h, w3_ref[...],
                         preferred_element_type=jnp.float32) + b3_ref[...]


def fc_stack(x, w1, b1, w2, b2, w3, b3):
    N = x.shape[0]
    C = w3.shape[1]
    return pl.pallas_call(
        _fc_stack_kernel,
        out_shape=jax.ShapeDtypeStruct((N, C), jnp.float32),
    )(x, w1, b1, w2, b2, w3, b3)


# --------------------------- parameter preparation --------------------------

def _make_pool_matrix(oh, ow):
    """(oh*ow, (2*oh)*(2*ow)) matrix: rows average the 4 taps of a 2x2 window."""
    p = np.zeros((oh * ow, (2 * oh) * (2 * ow)), np.float32)
    for py in range(oh):
        for px in range(ow):
            r = py * ow + px
            for a in range(2):
                for b in range(2):
                    p[r, (2 * py + a) * (2 * ow) + (2 * px + b)] = 0.25
    return p


def _pad2d(x, rows=None, cols=None):
    r = x.shape[0] if rows is None else rows
    c = x.shape[1] if cols is None else cols
    return jnp.pad(x, ((0, r - x.shape[0]), (0, c - x.shape[1])))


def init_params(key, num_classes=10):
    """PyTorch-layout parameters (Conv: OIHW, Linear: (out, in))."""
    ks = jax.random.split(key, 10)
    s = 0.1
    return {
        "w1": jax.random.normal(ks[0], (6, 1, 5, 5), jnp.float32) * s,
        "b1": jax.random.normal(ks[1], (6,), jnp.float32) * s,
        "w2": jax.random.normal(ks[2], (16, 6, 5, 5), jnp.float32) * s,
        "b2": jax.random.normal(ks[3], (16,), jnp.float32) * s,
        "wf1": jax.random.normal(ks[4], (120, 16 * 5 * 5), jnp.float32) * s,
        "bf1": jax.random.normal(ks[5], (120,), jnp.float32) * s,
        "wf2": jax.random.normal(ks[6], (84, 120), jnp.float32) * s,
        "bf2": jax.random.normal(ks[7], (84,), jnp.float32) * s,
        "wf3": jax.random.normal(ks[8], (num_classes, 84), jnp.float32) * s,
        "bf3": jax.random.normal(ks[9], (num_classes,), jnp.float32) * s,
    }


def prepare_params(params, num_classes=10):
    """One-time conversion to kernel layout: matmul weights, 128-padded lanes,
    torch NCHW-flatten order folded into fc1, constant pooling matrices."""
    w1 = params["w1"].reshape(6, 25).T                       # (25, 6)
    w2 = params["w2"].reshape(16, 150).T                     # (150, 16)
    # Our flatten order after conv2+pool is (spatial, channel); torch's
    # .view(-1, 400) order is (channel, spatial).  Permute fc1 columns so the
    # kernel never needs a transpose.
    wf1 = jnp.transpose(params["wf1"].reshape(120, 16, 25),
                        (2, 1, 0)).reshape(400, 120)         # (400, 120)
    wf2 = params["wf2"].T                                    # (120, 84)
    wf3 = params["wf3"].T                                    # (84, num_classes)

    return {
        "w1": _pad2d(w1, cols=LANE),                                   # (25, 128)
        "b1": _pad2d(params["b1"].reshape(1, 6), cols=LANE),           # (1, 128)
        "w2": _pad2d(w2, cols=LANE),                                   # (150, 128)
        "b2": _pad2d(params["b2"].reshape(1, 16), cols=LANE),          # (1, 128)
        "wf1": _pad2d(wf1, cols=LANE),                                 # (400, 128)
        "bf1": _pad2d(params["bf1"].reshape(1, 120), cols=LANE),       # (1, 128)
        "wf2": _pad2d(wf2, rows=LANE, cols=LANE),                      # (128, 128)
        "bf2": _pad2d(params["bf2"].reshape(1, 84), cols=LANE),        # (1, 128)
        "wf3": _pad2d(wf3, rows=LANE, cols=LANE),                      # (128, 128)
        "bf3": _pad2d(params["bf3"].reshape(1, num_classes), cols=LANE),
        "pool1": jnp.asarray(_make_pool_matrix(14, 14)),               # (196, 784)
        "pool2": jnp.asarray(_make_pool_matrix(5, 5)),                 # (25, 100)
    }


# ------------------------------ model forward -------------------------------

def lenet_forward(kp, x, num_classes=10):
    """x: (N, 1, 28, 28) NCHW float32 (same interface as the PyTorch module)."""
    N = x.shape[0]
    xin = x.reshape(N, 28, 28, 1)                            # NHWC (Cin == 1)

    # conv1 (5x5, pad=2) as im2col matmul, fused with ReLU + 2x2 avg-pool.
    p1 = lax.conv_general_dilated_patches(
        xin, (5, 5), (1, 1), padding=((2, 2), (2, 2)),
        dimension_numbers=("NHWC", "HWIO", "NHWC"))          # (N, 28, 28, 25)
    p1 = p1.reshape(N, 28 * 28, 25)
    a1 = conv_relu_pool(p1, kp["w1"], kp["b1"], kp["pool1"])  # (N, 196, 128)
    a1 = a1[:, :, :6].reshape(N, 14, 14, 6)                  # pooled conv1, NHWC

    # conv2 (5x5, valid) as im2col matmul, fused with ReLU + 2x2 avg-pool.
    # Patch feature ordering is (Cin, KH, KW) == w2.reshape(16, 150) ordering.
    p2 = lax.conv_general_dilated_patches(
        a1, (5, 5), (1, 1), padding="VALID",
        dimension_numbers=("NHWC", "HWIO", "NHWC"))          # (N, 10, 10, 150)
    p2 = p2.reshape(N, 10 * 10, 150)
    a2 = conv_relu_pool(p2, kp["w2"], kp["b2"], kp["pool2"])  # (N, 25, 128)

    # Flatten in (spatial, channel) order; torch's (channel, spatial) order is
    # already folded into kp["wf1"].
    feat = a2[:, :, :16].reshape(N, 400)

    logits = fc_stack(feat, kp["wf1"], kp["bf1"], kp["wf2"], kp["bf2"],
                      kp["wf3"], kp["bf3"])                   # (N, 128)
    return logits[:, :num_classes]


# --------------------------- pure-JAX reference ------------------------------

def lenet_reference(params, x):
    def conv(h, w, b, padding):
        out = lax.conv_general_dilated(
            h, w, (1, 1), padding, dimension_numbers=("NCHW", "OIHW", "NCHW"))
        return out + b.reshape(1, -1, 1, 1)

    def pool(h):
        return lax.reduce_window(h, 0.0, lax.add, (1, 1, 2, 2), (1, 1, 2, 2),
                                 "VALID") * 0.25

    h = jax.nn.relu(conv(x, params["w1"], params["b1"], ((2, 2), (2, 2))))
    h = pool(h)
    h = jax.nn.relu(conv(h, params["w2"], params["b2"], ((0, 0), (0, 0))))
    h = pool(h)
    h = h.reshape(h.shape[0], -1)
    h = jax.nn.relu(h @ params["wf1"].T + params["bf1"])
    h = jax.nn.relu(h @ params["wf2"].T + params["bf2"])
    return h @ params["wf3"].T + params["bf3"]


if __name__ == "__main__":
    key = jax.random.PRNGKey(0)
    k_param, k_x = jax.random.split(key)
    params = init_params(k_param, num_classes=10)
    kp = prepare_params(params, num_classes=10)

    # LeNet fc1 = 16*5*5 implies 28x28 input; small batch of 2.
    x = jax.random.normal(k_x, (2, 1, 28, 28), jnp.float32)

    out = jax.jit(lenet_forward)(kp, x)
    out = jax.block_until_ready(out)
    assert out.shape == (2, 10), out.shape

    ref = jax.block_until_ready(lenet_reference(params, x))
    np.testing.assert_allclose(np.asarray(out), np.asarray(ref),
                               rtol=2e-2, atol=2e-2)
    print("KERNEL_OK")
</pallas_src>

<mosaic_0001>
module attributes {stable_mosaic.version = 11 : i64} {
  func.func @_conv_relu_pool_kernel(%arg0: i32, %arg1: memref<1x784x25xf32, #tpu.memory_space<vmem>>, %arg2: memref<25x128xf32, #tpu.memory_space<vmem>>, %arg3: memref<1x128xf32, #tpu.memory_space<vmem>>, %arg4: memref<196x784xf32, #tpu.memory_space<vmem>>, %arg5: memref<1x196x128xf32, #tpu.memory_space<vmem>>) attributes {dimension_semantics = [#tpu.dimension_semantics<parallel>], iteration_bounds = array<i64: 2>, scalar_prefetch = 0 : i64, scratch_operands = 0 : i64, tpu.core_type = #tpu.core_type<tc>, window_params = [{transform_indices = @transform_0, window_bounds = array<i64: 1, 784, 25>}, {pipeline_mode = #tpu.pipeline_mode<synchronous>, transform_indices = @transform_1, window_bounds = array<i64: 25, 128>}, {pipeline_mode = #tpu.pipeline_mode<synchronous>, transform_indices = @transform_2, window_bounds = array<i64: 1, 128>}, {pipeline_mode = #tpu.pipeline_mode<synchronous>, transform_indices = @transform_3, window_bounds = array<i64: 196, 784>}, {transform_indices = @transform_4, window_bounds = array<i64: 1, 196, 128>}]} {
    %c0 = arith.constant 0 : index
    %c0_0 = arith.constant 0 : index
    %c0_1 = arith.constant 0 : index
    %0 = vector.load %arg1[%c0, %c0_0, %c0_1] : memref<1x784x25xf32, #tpu.memory_space<vmem>>, vector<1x784x25xf32>
    %1 = vector.shape_cast %0 : vector<1x784x25xf32> to vector<784x25xf32>
    %c0_2 = arith.constant 0 : index
    %c0_3 = arith.constant 0 : index
    %2 = vector.load %arg2[%c0_2, %c0_3] : memref<25x128xf32, #tpu.memory_space<vmem>>, vector<25x128xf32>
    %cst = arith.constant dense<0.000000e+00> : vector<784x128xf32>
    %3 = tpu.matmul %1, %2, %cst {dimension_numbers = #tpu.dot_dimension_numbers<[1], [0], [0], [1], [0, 0, 1, 1], [], []>} : vector<784x25xf32>, vector<25x128xf32>, vector<784x128xf32> -> vector<784x128xf32>
    %c0_4 = arith.constant 0 : index
    %c0_5 = arith.constant 0 : index
    %4 = vector.load %arg3[%c0_4, %c0_5] : memref<1x128xf32, #tpu.memory_space<vmem>>, vector<1x128xf32>
    %5 = vector.broadcast %4 : vector<1x128xf32> to vector<784x128xf32>
    %6 = arith.addf %3, %5 : vector<784x128xf32>
    %cst_6 = arith.constant 0.000000e+00 : f32
    %7 = vector.broadcast %cst_6 : f32 to vector<784x128xf32>
    %8 = arith.maximumf %6, %7 : vector<784x128xf32>
    %c0_7 = arith.constant 0 : index
    %c0_8 = arith.constant 0 : index
    %9 = vector.load %arg4[%c0_7, %c0_8] : memref<196x784xf32, #tpu.memory_space<vmem>>, vector<196x784xf32>
    %cst_9 = arith.constant dense<0.000000e+00> : vector<196x128xf32>
    %10 = tpu.matmul %9, %8, %cst_9 {dimension_numbers = #tpu.dot_dimension_numbers<[1], [0], [0], [1], [0, 0, 1, 1], [], []>} : vector<196x784xf32>, vector<784x128xf32>, vector<196x128xf32> -> vector<196x128xf32>
    %c0_10 = arith.constant 0 : index
    %c0_11 = arith.constant 0 : index
    %c0_12 = arith.constant 0 : index
    %11 = vector.load %arg5[%c0_10, %c0_11, %c0_12] : memref<1x196x128xf32, #tpu.memory_space<vmem>>, vector<1x196x128xf32>
    %12 = vector.shape_cast %11 : vector<1x196x128xf32> to vector<196x128xf32>
    %13 = vector.shape_cast %10 : vector<196x128xf32> to vector<1x196x128xf32>
    tpu.vector_store %arg5[%c0_10, %c0_11, %c0_12], %13 {strides = array<i32>} : memref<1x196x128xf32, #tpu.memory_space<vmem>>, vector<1x196x128xf32>,
    return
  }
  func.func @transform_0(%arg0: i32) -> (i32, i32, i32) {
    %c0_i32 = arith.constant 0 : i32
    %c0_i32_0 = arith.constant 0 : i32
    %c0_i32_1 = arith.constant 0 : i32
    return %arg0, %c0_i32, %c0_i32_0 : i32, i32, i32
  }
  func.func @transform_1(%arg0: i32) -> (i32, i32) {
    %c0_i32 = arith.constant 0 : i32
    %c0_i32_0 = arith.constant 0 : i32
    %c0_i32_1 = arith.constant 0 : i32
    return %c0_i32, %c0_i32_0 : i32, i32
  }
  func.func @transform_2(%arg0: i32) -> (i32, i32) {
    %c0_i32 = arith.constant 0 : i32
    %c0_i32_0 = arith.constant 0 : i32
    %c0_i32_1 = arith.constant 0 : i32
    return %c0_i32, %c0_i32_0 : i32, i32
  }
  func.func @transform_3(%arg0: i32) -> (i32, i32) {
    %c0_i32 = arith.constant 0 : i32
    %c0_i32_0 = arith.constant 0 : i32
    %c0_i32_1 = arith.constant 0 : i32
    return %c0_i32, %c0_i32_0 : i32, i32
  }
  func.func @transform_4(%arg0: i32) -> (i32, i32, i32) {
    %c0_i32 = arith.constant 0 : i32
    %c0_i32_0 = arith.constant 0 : i32
    %c0_i32_1 = arith.constant 0 : i32
    return %arg0, %c0_i32, %c0_i32_0 : i32, i32, i32
  }
}

module attributes {stable_mosaic.version = 11 : i64} {
  func.func @_conv_relu_pool_kernel(%arg0: i32, %arg1: memref<1x100x150xf32, #tpu.memory_space<vmem>>, %arg2: memref<150x128xf32, #tpu.memory_space<vmem>>, %arg3: memref<1x128xf32, #tpu.memory_space<vmem>>, %arg4: memref<25x100xf32, #tpu.memory_space<vmem>>, %arg5: memref<1x25x128xf32, #tpu.memory_space<vmem>>) attributes {dimension_semantics = [#tpu.dimension_semantics<parallel>], iteration_bounds = array<i64: 2>, scalar_prefetch = 0 : i64, scratch_operands = 0 : i64, tpu.core_type = #tpu.core_type<tc>, window_params = [{transform_indices = @transform_0, window_bounds = array<i64: 1, 100, 150>}, {pipeline_mode = #tpu.pipeline_mode<synchronous>, transform_indices = @transform_1, window_bounds = array<i64: 150, 128>}, {pipeline_mode = #tpu.pipeline_mode<synchronous>, transform_indices = @transform_2, window_bounds = array<i64: 1, 128>}, {pipeline_mode = #tpu.pipeline_mode<synchronous>, transform_indices = @transform_3, window_bounds = array<i64: 25, 100>}, {transform_indices = @transform_4, window_bounds = array<i64: 1, 25, 128>}]} {
    %c0 = arith.constant 0 : index
    %c0_0 = arith.constant 0 : index
    %c0_1 = arith.constant 0 : index
    %0 = vector.load %arg1[%c0, %c0_0, %c0_1] : memref<1x100x150xf32, #tpu.memory_space<vmem>>, vector<1x100x150xf32>
    %1 = vector.shape_cast %0 : vector<1x100x150xf32> to vector<100x150xf32>
    %c0_2 = arith.constant 0 : index
    %c0_3 = arith.constant 0 : index
    %2 = vector.load %arg2[%c0_2, %c0_3] : memref<150x128xf32, #tpu.memory_space<vmem>>, vector<150x128xf32>
    %cst = arith.constant dense<0.000000e+00> : vector<100x128xf32>
    %3 = tpu.matmul %1, %2, %cst {dimension_numbers = #tpu.dot_dimension_numbers<[1], [0], [0], [1], [0, 0, 1, 1], [], []>} : vector<100x150xf32>, vector<150x128xf32>, vector<100x128xf32> -> vector<100x128xf32>
    %c0_4 = arith.constant 0 : index
    %c0_5 = arith.constant 0 : index
    %4 = vector.load %arg3[%c0_4, %c0_5] : memref<1x128xf32, #tpu.memory_space<vmem>>, vector<1x128xf32>
    %5 = vector.broadcast %4 : vector<1x128xf32> to vector<100x128xf32>
    %6 = arith.addf %3, %5 : vector<100x128xf32>
    %cst_6 = arith.constant 0.000000e+00 : f32
    %7 = vector.broadcast %cst_6 : f32 to vector<100x128xf32>
    %8 = arith.maximumf %6, %7 : vector<100x128xf32>
    %c0_7 = arith.constant 0 : index
    %c0_8 = arith.constant 0 : index
    %9 = vector.load %arg4[%c0_7, %c0_8] : memref<25x100xf32, #tpu.memory_space<vmem>>, vector<25x100xf32>
    %cst_9 = arith.constant dense<0.000000e+00> : vector<25x128xf32>
    %10 = tpu.matmul %9, %8, %cst_9 {dimension_numbers = #tpu.dot_dimension_numbers<[1], [0], [0], [1], [0, 0, 1, 1], [], []>} : vector<25x100xf32>, vector<100x128xf32>, vector<25x128xf32> -> vector<25x128xf32>
    %c0_10 = arith.constant 0 : index
    %c0_11 = arith.constant 0 : index
    %c0_12 = arith.constant 0 : index
    %11 = vector.load %arg5[%c0_10, %c0_11, %c0_12] : memref<1x25x128xf32, #tpu.memory_space<vmem>>, vector<1x25x128xf32>
    %12 = vector.shape_cast %11 : vector<1x25x128xf32> to vector<25x128xf32>
    %13 = vector.shape_cast %10 : vector<25x128xf32> to vector<1x25x128xf32>
    tpu.vector_store %arg5[%c0_10, %c0_11, %c0_12], %13 {strides = array<i32>} : memref<1x25x128xf32, #tpu.memory_space<vmem>>, vector<1x25x128xf32>,
    return
  }
  func.func @transform_0(%arg0: i32) -> (i32, i32, i32) {
    %c0_i32 = arith.constant 0 : i32
    %c0_i32_0 = arith.constant 0 : i32
    %c0_i32_1 = arith.constant 0 : i32
    return %arg0, %c0_i32, %c0_i32_0 : i32, i32, i32
  }
  func.func @transform_1(%arg0: i32) -> (i32, i32) {
    %c0_i32 = arith.constant 0 : i32
    %c0_i32_0 = arith.constant 0 : i32
    %c0_i32_1 = arith.constant 0 : i32
    return %c0_i32, %c0_i32_0 : i32, i32
  }
  func.func @transform_2(%arg0: i32) -> (i32, i32) {
    %c0_i32 = arith.constant 0 : i32
    %c0_i32_0 = arith.constant 0 : i32
    %c0_i32_1 = arith.constant 0 : i32
    return %c0_i32, %c0_i32_0 : i32, i32
  }
  func.func @transform_3(%arg0: i32) -> (i32, i32) {
    %c0_i32 = arith.constant 0 : i32
    %c0_i32_0 = arith.constant 0 : i32
    %c0_i32_1 = arith.constant 0 : i32
    return %c0_i32, %c0_i32_0 : i32, i32
  }
  func.func @transform_4(%arg0: i32) -> (i32, i32, i32) {
    %c0_i32 = arith.constant 0 : i32
    %c0_i32_0 = arith.constant 0 : i32
    %c0_i32_1 = arith.constant 0 : i32
    return %arg0, %c0_i32, %c0_i32_0 : i32, i32, i32
  }
}

module attributes {stable_mosaic.version = 11 : i64} {
  func.func @_fc_stack_kernel(%arg0: memref<2x400xf32, #tpu.memory_space<vmem>>, %arg1: memref<400x128xf32, #tpu.memory_space<vmem>>, %arg2: memref<1x128xf32, #tpu.memory_space<vmem>>, %arg3: memref<128x128xf32, #tpu.memory_space<vmem>>, %arg4: memref<1x128xf32, #tpu.memory_space<vmem>>, %arg5: memref<128x128xf32, #tpu.memory_space<vmem>>, %arg6: memref<1x128xf32, #tpu.memory_space<vmem>>, %arg7: memref<2x128xf32, #tpu.memory_space<vmem>>) attributes {dimension_semantics = [], scalar_prefetch = 0 : i64, scratch_operands = 0 : i64, tpu.core_type = #tpu.core_type<tc>} {
    %c0 = arith.constant 0 : index
    %c0_0 = arith.constant 0 : index
    %0 = vector.load %arg0[%c0, %c0_0] : memref<2x400xf32, #tpu.memory_space<vmem>>, vector<2x400xf32>
    %c0_1 = arith.constant 0 : index
    %c0_2 = arith.constant 0 : index
    %1 = vector.load %arg1[%c0_1, %c0_2] : memref<400x128xf32, #tpu.memory_space<vmem>>, vector<400x128xf32>
    %cst = arith.constant dense<0.000000e+00> : vector<2x128xf32>
    %2 = tpu.matmul %0, %1, %cst {dimension_numbers = #tpu.dot_dimension_numbers<[1], [0], [0], [1], [0, 0, 1, 1], [], []>} : vector<2x400xf32>, vector<400x128xf32>, vector<2x128xf32> -> vector<2x128xf32>
    %c0_3 = arith.constant 0 : index
    %c0_4 = arith.constant 0 : index
    %3 = vector.load %arg2[%c0_3, %c0_4] : memref<1x128xf32, #tpu.memory_space<vmem>>, vector<1x128xf32>
    %4 = vector.broadcast %3 : vector<1x128xf32> to vector<2x128xf32>
    %5 = arith.addf %2, %4 : vector<2x128xf32>
    %cst_5 = arith.constant 0.000000e+00 : f32
    %6 = vector.broadcast %cst_5 : f32 to vector<2x128xf32>
    %7 = arith.maximumf %5, %6 : vector<2x128xf32>
    %c0_6 = arith.constant 0 : index
    %c0_7 = arith.constant 0 : index
    %8 = vector.load %arg3[%c0_6, %c0_7] : memref<128x128xf32, #tpu.memory_space<vmem>>, vector<128x128xf32>
    %cst_8 = arith.constant dense<0.000000e+00> : vector<2x128xf32>
    %9 = tpu.matmul %7, %8, %cst_8 {dimension_numbers = #tpu.dot_dimension_numbers<[1], [0], [0], [1], [0, 0, 1, 1], [], []>} : vector<2x128xf32>, vector<128x128xf32>, vector<2x128xf32> -> vector<2x128xf32>
    %c0_9 = arith.constant 0 : index
    %c0_10 = arith.constant 0 : index
    %10 = vector.load %arg4[%c0_9, %c0_10] : memref<1x128xf32, #tpu.memory_space<vmem>>, vector<1x128xf32>
    %11 = vector.broadcast %10 : vector<1x128xf32> to vector<2x128xf32>
    %12 = arith.addf %9, %11 : vector<2x128xf32>
    %cst_11 = arith.constant 0.000000e+00 : f32
    %13 = vector.broadcast %cst_11 : f32 to vector<2x128xf32>
    %14 = arith.maximumf %12, %13 : vector<2x128xf32>
    %c0_12 = arith.constant 0 : index
    %c0_13 = arith.constant 0 : index
    %15 = vector.load %arg5[%c0_12, %c0_13] : memref<128x128xf32, #tpu.memory_space<vmem>>, vector<128x128xf32>
    %cst_14 = arith.constant dense<0.000000e+00> : vector<2x128xf32>
    %16 = tpu.matmul %14, %15, %cst_14 {dimension_numbers = #tpu.dot_dimension_numbers<[1], [0], [0], [1], [0, 0, 1, 1], [], []>} : vector<2x128xf32>, vector<128x128xf32>, vector<2x128xf32> -> vector<2x128xf32>
    %c0_15 = arith.constant 0 : index
    %c0_16 = arith.constant 0 : index
    %17 = vector.load %arg6[%c0_15, %c0_16] : memref<1x128xf32, #tpu.memory_space<vmem>>, vector<1x128xf32>
    %18 = vector.broadcast %17 : vector<1x128xf32> to vector<2x128xf32>
    %19 = arith.addf %16, %18 : vector<2x128xf32>
    %c0_17 = arith.constant 0 : index
    %c0_18 = arith.constant 0 : index
    %20 = vector.load %arg7[%c0_17, %c0_18] : memref<2x128xf32, #tpu.memory_space<vmem>>, vector<2x128xf32>
    tpu.vector_store %arg7[%c0_17, %c0_18], %19 {strides = array<i32>} : memref<2x128xf32, #tpu.memory_space<vmem>>, vector<2x128xf32>,
    return
  }
}

</mosaic_0001>

<bundles_post_ra>
// kernel: lenet_forward.3
= control target key start
LH: loop header
LB: loop body
LE: loop exit
PB: predicated region body
PF: predicated region fallthrough
CT: control target
= control target key end

     0   :  { %s3213_s15 = smov 0   ;;  %s4298_s0 = inlined_call_operand.vmem [shape: f32[2,784,25], index: 0, kind: input, shape index: {}]   ;;  %s4299_s1 = inlined_call_operand.vmem [shape: f32[25,128], index: 1, kind: input, shape index: {}]   ;;  %s4300_s2 = inlined_call_operand.vmem [shape: f32[1,128], index: 2, kind: input, shape index: {}]   ;;  %s4301_s3 = inlined_call_operand.vmem [shape: f32[196,784], index: 3, kind: input, shape index: {}]   ;;  %s4302_s4 = inlined_call_operand.vmem [shape: f32[2,196,128], index: 4, kind: output, shape index: {}]  }
   0x1 LB: > { %s2350_s16 = sadd.s32 4294967295, %s3182_s15   ;;  %p2354_p0 = scmp.ge.s32.totalorder %s3182_s15, 1  ;;  %s3182_s15 = sphi %s3213_s15, %s14_s15  }
   0x2   : > { %p162_p1 = scmp.lt.s32.totalorder %s3182_s15, 3 }
   0x4   : > { %p163_p2 = pnand %p2354_p0, %p162_p1 }
   0x5   : > { %v296_v0 = vld [vmem:[%s4299_s1] sm:$0xff] (!%p163_p2)  ;;  %v297_v1 = vld [vmem:[%s4299_s1 + $0x8] sm:$0xff] (!%p163_p2)  ;;  %v298_v2 = vld [vmem:[%s4299_s1 + $0x10] sm:$0xff] (!%p163_p2)  ;;  %vm602_vm0 = vcmask (!%p163_p2), 1040384   ;;  %p188_p3 = scmp.lt.s32.totalorder (!%p163_p2), %s2350_s16, 1  ;;  %vm3184_vm1 = vmmov (!%p163_p2), 1  }
   0x6   : > { %166 = sbr.rel (%p163_p2) target bundleno = 848 (0x350), region = 36  ;;  %v2847_v3 = vpack.c.bf16 (!%p163_p2), %v297_v1, %v296_v0  ;;  %v299_v4 = vld [vmem:[%s4299_s1 + $0x18] sm:$0x1] (!%p163_p2)  ;;  %vm2852_vm2 = vmpackc.low (!%p163_p2), %vm602_vm0, %vm3184_vm1  ;;  %vm307_vm3 = vcmask (!%p163_p2), 203776   ;;  %v3185_v55 = vmov (!%p163_p2), 0.0|0.0   ;;  %vm3186_vm4 = vmmov (!%p163_p2), 0  }
   0x7   : > { %v2851_v5 = vpack.c.bf16 (!%p163_p2), %v299_v4, %v298_v2  ;;  %3004 = vmatprep.subr.bf16.mxu1 (!%p163_p2), %v3185_v55  ;;  %vm1434_vm5 = vcmask (!%p163_p2), 130048  }
   0x8   : > { %2848 = vmatprep.subr.bf16.mxu0 (!%p163_p2), %v2847_v3 }
   0x9   : > { %2850 = vmatpush3.bf16.msra.mxu0 (!%p163_p2), %v2847_v3 }
   0xa   : > { %2853 = vmatprep.subr.msk.bf16.mxu0 (!%p163_p2), %vm2852_vm2, %v2851_v5 }
   0xd   : > { %s4304_s16 = smov (!%p188_p3, %s2350_s16), 1  ;;  %2856 = vmatpush3.bf16.msk.msra.mxu0 %vm2852_vm2, %v2851_v5 }
   0xe   : > { %s3161_s25 = smul.u32 784, %s4304_s16  ;;  %2857 = vmatprep.subr.bf16.mxu0 %v3185_v55 }
   0xf   : > { %s3162_s23 = smul.u32 200, %s4304_s16 }
  0x10   : > { %s3239_s28 = scalar_lea.vmem %s4298_s0, %s3161_s25 }
  0x11   : > { %v198_v6 = vld [vmem:[%s3239_s28] sm:$0xff]  ;;  %v199_v7 = vld [vmem:[%s3239_s28 + $0x8] sm:$0xff]  ;;  %v200_v8 = vld [vmem:[%s3239_s28 + $0x10] sm:$0xff]  ;;  %s4250_s26 = scalar_lea.vmem %s4302_s4, %s3162_s23 }
  0x12   : > { %2621 = vmatprep.mubr.msk.f32.mxu0 %vm307_vm3, %v198_v6  ;;  %v201_v9 = vld [vmem:[%s3239_s28 + $0x18] sm:$0xff]  ;;  %v202_v10 = vld [vmem:[%s3239_s28 + $0x20] sm:$0xff]  ;;  %v203_v11 = vld [vmem:[%s3239_s28 + $0x28] sm:$0xff] }
  0x13   : > { %2622 = vmatmul.mubr.msk.f32.vlgmr.msra.gmra.mrb[0].mxu0 %vm307_vm3, %v199_v7  ;;  %v204_v12 = vld [vmem:[%s3239_s28 + $0x30] sm:$0xff]  ;;  %v205_v13 = vld [vmem:[%s3239_s28 + $0x38] sm:$0xff]  ;;  %v206_v14 = vld [vmem:[%s3239_s28 + $0x40] sm:$0xff] }
  0x14   : > { %2624 = vmatprep.mubr.msk.f32.mxu0 %vm307_vm3, %v200_v8  ;;  %v207_v15 = vld [vmem:[%s3239_s28 + $0x48] sm:$0xff]  ;;  %v208_v16 = vld [vmem:[%s3239_s28 + $0x50] sm:$0xff]  ;;  %v209_v17 = vld [vmem:[%s3239_s28 + $0x58] sm:$0xff] }
  0x15   : > { %v210_v18 = vld [vmem:[%s3239_s28 + $0x60] sm:$0xff]  ;;  %v211_v19 = vld [vmem:[%s3239_s28 + $0x68] sm:$0xff]  ;;  %v212_v20 = vld [vmem:[%s3239_s28 + $0x70] sm:$0xff] }
  0x16   : > { %v213_v21 = vld [vmem:[%s3239_s28 + $0x78] sm:$0xff]  ;;  %v214_v22 = vld [vmem:[%s3239_s28 + $0x80] sm:$0xff]  ;;  %v215_v23 = vld [vmem:[%s3239_s28 + $0x88] sm:$0xff] }
  0x17   : > { %2625 = vmatmul.mubr.msk.f32.gmra.mrb[2].mxu0 %vm307_vm3, %v201_v9  ;;  %v216_v24 = vld [vmem:[%s3239_s28 + $0x90] sm:$0xff]  ;;  %v217_v25 = vld [vmem:[%s3239_s28 + $0x98] sm:$0xff]  ;;  %v218_v26 = vld [vmem:[%s3239_s28 + $0xa0] sm:$0xff] }
  0x18   : > { %2627 = vmatprep.mubr.msk.f32.mxu0 %vm307_vm3, %v202_v10  ;;  %v219_v27 = vld [vmem:[%s3239_s28 + $0xa8] sm:$0xff]  ;;  %v220_v28 = vld [vmem:[%s3239_s28 + $0xb0] sm:$0xff]  ;;  %v221_v29 = vld [vmem:[%s3239_s28 + $0xb8] sm:$0xff] }
  0x19   : > { %v222_v30 = vld [vmem:[%s3239_s28 + $0xc0] sm:$0xff]  ;;  %v223_v31 = vld [vmem:[%s3239_s28 + $0xc8] sm:$0xff]  ;;  %v224_v32 = vld [vmem:[%s3239_s28 + $0xd0] sm:$0xff] }
  0x1a   : > { %v225_v33 = vld [vmem:[%s3239_s28 + $0xd8] sm:$0xff]  ;;  %v226_v34 = vld [vmem:[%s3239_s28 + $0xe0] sm:$0xff]  ;;  %v227_v35 = vld [vmem:[%s3239_s28 + $0xe8] sm:$0xff] }
  0x1b   : > { %2628 = vmatmul.mubr.msk.f32.gmra.mrb[4].mxu0 %vm307_vm3, %v203_v11  ;;  %v228_v36 = vld [vmem:[%s3239_s28 + $0xf0] sm:$0xff]  ;;  %v229_v37 = vld [vmem:[%s3239_s28 + $0xf8] sm:$0xff]  ;;  %v230_v38 = vld [vmem:[%s3239_s28 + $0x100] sm:$0xff] }
  0x1c   : > { %2630 = vmatprep.mubr.msk.f32.mxu0 %vm307_vm3, %v204_v12  ;;  %v231_v39 = vld [vmem:[%s3239_s28 + $0x108] sm:$0xff]  ;;  %v232_v40 = vld [vmem:[%s3239_s28 + $0x110] sm:$0xff]  ;;  %v233_v41 = vld [vmem:[%s3239_s28 + $0x118] sm:$0xff] }
  0x1d   : > { %v234_v42 = vld [vmem:[%s3239_s28 + $0x120] sm:$0xff]  ;;  %v235_v43 = vld [vmem:[%s3239_s28 + $0x128] sm:$0xff]  ;;  %v236_v44 = vld [vmem:[%s3239_s28 + $0x130] sm:$0xff] }
  0x1e   : > { %v237_v45 = vld [vmem:[%s3239_s28 + $0x138] sm:$0xff]  ;;  %v238_v46 = vld [vmem:[%s3239_s28 + $0x140] sm:$0xff]  ;;  %v239_v47 = vld [vmem:[%s3239_s28 + $0x148] sm:$0xff] }
  0x1f   : > { %2631 = vmatmul.mubr.msk.f32.gmra.mrb[6].mxu0 %vm307_vm3, %v205_v13  ;;  %v240_v48 = vld [vmem:[%s3239_s28 + $0x150] sm:$0xff]  ;;  %v241_v49 = vld [vmem:[%s3239_s28 + $0x158] sm:$0xff]  ;;  %v242_v50 = vld [vmem:[%s3239_s28 + $0x160] sm:$0xff] }
  0x20   : > { %2633 = vmatprep.mubr.msk.f32.mxu0 %vm307_vm3, %v206_v14  ;;  %v243_v51 = vld [vmem:[%s3239_s28 + $0x168] sm:$0xff]  ;;  %v244_v52 = vld [vmem:[%s3239_s28 + $0x170] sm:$0xff]  ;;  %v245_v53 = vld [vmem:[%s3239_s28 + $0x178] sm:$0xff] }
  0x21   : > { %v246_v54 = vld [vmem:[%s3239_s28 + $0x180] sm:$0xff]  ;;  %v247_v56 = vld [vmem:[%s3239_s28 + $0x188] sm:$0xff]  ;;  %v248_v57 = vld [vmem:[%s3239_s28 + $0x190] sm:$0xff] }
  0x22   : > { %v249_v58 = vld [vmem:[%s3239_s28 + $0x198] sm:$0xff]  ;;  %v250_v59 = vld [vmem:[%s3239_s28 + $0x1a0] sm:$0xff]  ;;  %v251_v60 = vld [vmem:[%s3239_s28 + $0x1a8] sm:$0xff] }
  0x23   : > { %2634 = vmatmul.mubr.msk.f32.gmra.mrb[8].mxu0 %vm307_vm3, %v207_v15  ;;  %v252_v61 = vld [vmem:[%s3239_s28 + $0x1b0] sm:$0xff]  ;;  %v253_v62 = vld [vmem:[%s3239_s28 + $0x1b8] sm:$0xff]  ;;  %v254_v63 = vld [vmem:[%s3239_s28 + $0x1c0] sm:$0xff] }
  0x24   : > { %2636 = vmatprep.mubr.msk.f32.mxu0 %vm307_vm3, %v208_v16  ;;  %v255_v0 = vld [vmem:[%s3239_s28 + $0x1c8] sm:$0xff]  ;;  %v256_v1 = vld [vmem:[%s3239_s28 + $0x1d0] sm:$0xff]  ;;  %v257_v2 = vld [vmem:[%s3239_s28 + $0x1d8] sm:$0xff] }
  0x25   : > { %v258_v3 = vld [vmem:[%s3239_s28 + $0x1e0] sm:$0xff]  ;;  %v259_v4 = vld [vmem:[%s3239_s28 + $0x1e8] sm:$0xff]  ;;  %v260_v5 = vld [vmem:[%s3239_s28 + $0x1f0] sm:$0xff] }
  0x26   : > { %v261_v6 = vld [vmem:[%s3239_s28 + $0x1f8] sm:$0xff]  ;;  %v262_v7 = vld [vmem:[%s3239_s28 + $0x200] sm:$0xff]  ;;  %v263_v8 = vld [vmem:[%s3239_s28 + $0x208] sm:$0xff] }
  0x27   : > { %2637 = vmatmul.mubr.msk.f32.gmra.mrb[10].mxu0 %vm307_vm3, %v209_v17  ;;  %v264_v9 = vld [vmem:[%s3239_s28 + $0x210] sm:$0xff]  ;;  %v265_v10 = vld [vmem:[%s3239_s28 + $0x218] sm:$0xff]  ;;  %v266_v11 = vld [vmem:[%s3239_s28 + $0x220] sm:$0xff] }
  0x28   : > { %2639 = vmatprep.mubr.msk.f32.mxu0 %vm307_vm3, %v210_v18  ;;  %v267_v12 = vld [vmem:[%s3239_s28 + $0x228] sm:$0xff]  ;;  %v268_v13 = vld [vmem:[%s3239_s28 + $0x230] sm:$0xff]  ;;  %v269_v14 = vld [vmem:[%s3239_s28 + $0x238] sm:$0xff] }
  0x29   : > { %v270_v15 = vld [vmem:[%s3239_s28 + $0x240] sm:$0xff]  ;;  %v271_v16 = vld [vmem:[%s3239_s28 + $0x248] sm:$0xff]  ;;  %v272_v17 = vld [vmem:[%s3239_s28 + $0x250] sm:$0xff] }
  0x2a   : > { %v273_v18 = vld [vmem:[%s3239_s28 + $0x258] sm:$0xff] }
  0x2b   : > { %2640 = vmatmul.mubr.msk.f32.gmra.mrb[12].mxu0 %vm307_vm3, %v211_v19  ;;  %v274_v19 = vld [vmem:[%s3239_s28 + $0x260] sm:$0xff] }
  0x2c   : > { %2642 = vmatprep.mubr.msk.f32.mxu0 %vm307_vm3, %v212_v20  ;;  %v275_v20 = vld [vmem:[%s3239_s28 + $0x268] sm:$0xff] }
  0x2f   : > { %2643 = vmatmul.mubr.msk.f32.gmra.mrb[14].mxu0 %vm307_vm3, %v213_v21  ;;  %v276_v21 = vld [vmem:[%s3239_s28 + $0x270] sm:$0xff] }
  0x30   : > { %2645 = vmatprep.mubr.msk.f32.mxu0 %vm307_vm3, %v214_v22  ;;  %v277_v22 = vld [vmem:[%s3239_s28 + $0x278] sm:$0xff] }
  0x33   : > { %2646 = vmatmul.mubr.msk.f32.gmra.mrb[16].mxu0 %vm307_vm3, %v215_v23  ;;  %v278_v23 = vld [vmem:[%s3239_s28 + $0x280] sm:$0xff] }
  0x34   : > { %2648 = vmatprep.mubr.msk.f32.mxu0 %vm307_vm3, %v216_v24  ;;  %v279_v24 = vld [vmem:[%s3239_s28 + $0x288] sm:$0xff] }
  0x37   : > { %2649 = vmatmul.mubr.msk.f32.gmra.mrb[18].mxu0 %vm307_vm3, %v217_v25  ;;  %v280_v25 = vld [vmem:[%s3239_s28 + $0x290] sm:$0xff] }
  0x38   : > { %2651 = vmatprep.mubr.msk.f32.mxu0 %vm307_vm3, %v218_v26  ;;  %v281_v26 = vld [vmem:[%s3239_s28 + $0x298] sm:$0xff] }
  0x3b   : > { %2652 = vmatmul.mubr.msk.f32.gmra.mrb[20].mxu0 %vm307_vm3, %v219_v27  ;;  %v282_v27 = vld [vmem:[%s3239_s28 + $0x2a0] sm:$0xff] }
  0x3c   : > { %2654 = vmatprep.mubr.msk.f32.mxu0 %vm307_vm3, %v220_v28  ;;  %v283_v28 = vld [vmem:[%s3239_s28 + $0x2a8] sm:$0xff] }
  0x3f   : > { %2655 = vmatmul.mubr.msk.f32.gmra.mrb[22].mxu0 %vm307_vm3, %v221_v29  ;;  %v284_v29 = vld [vmem:[%s3239_s28 + $0x2b0] sm:$0xff] }
  0x40   : > { %2657 = vmatprep.mubr.msk.f32.mxu0 %vm307_vm3, %v222_v30  ;;  %v285_v30 = vld [vmem:[%s3239_s28 + $0x2b8] sm:$0xff] }
  0x43   : > { %2658 = vmatmul.mubr.msk.f32.gmra.mrb[24].mxu0 %vm307_vm3, %v223_v31  ;;  %v286_v31 = vld [vmem:[%s3239_s28 + $0x2c0] sm:$0xff] }
  0x44   : > { %2660 = vmatprep.mubr.msk.f32.mxu0 %vm307_vm3, %v224_v32  ;;  %v287_v32 = vld [vmem:[%s3239_s28 + $0x2c8] sm:$0xff] }
  0x47   : > { %2661 = vmatmul.mubr.msk.f32.gmra.mrb[26].mxu0 %vm307_vm3, %v225_v33  ;;  %v288_v33 = vld [vmem:[%s3239_s28 + $0x2d0] sm:$0xff] }
  0x48   : > { %2663 = vmatprep.mubr.msk.f32.mxu0 %vm307_vm3, %v226_v34  ;;  %v289_v34 = vld [vmem:[%s3239_s28 + $0x2d8] sm:$0xff] }
  0x4b   : > { %2664 = vmatmul.mubr.msk.f32.gmra.mrb[28].mxu0 %vm307_vm3, %v227_v35  ;;  %v290_v35 = vld [vmem:[%s3239_s28 + $0x2e0] sm:$0xff] }
  0x4c   : > { %2666 = vmatprep.mubr.msk.f32.mxu0 %vm307_vm3, %v228_v36  ;;  %v291_v36 = vld [vmem:[%s3239_s28 + $0x2e8] sm:$0xff] }
  0x4f   : > { %2667 = vmatmul.mubr.msk.f32.gmra.mrb[30].mxu0 %vm307_vm3, %v229_v37  ;;  %v292_v37 = vld [vmem:[%s3239_s28 + $0x2f0] sm:$0xff] }
  0x50   : > { %2669 = vmatprep.mubr.msk.f32.mxu0 %vm307_vm3, %v230_v38  ;;  %v293_v38 = vld [vmem:[%s3239_s28 + $0x2f8] sm:$0xff] }
  0x53   : > { %2670 = vmatmul.mubr.msk.f32.gmra.mrb[32].mxu0 %vm307_vm3, %v231_v39  ;;  %v294_v39 = vld [vmem:[%s3239_s28 + $0x300] sm:$0xff] }
  0x54   : > { %2672 = vmatprep.mubr.msk.f32.mxu0 %vm307_vm3, %v232_v40  ;;  %v295_v40 = vld [vmem:[%s3239_s28 + $0x308] sm:$0xff] }
  0x57   : > { %2673 = vmatmul.mubr.msk.f32.gmra.mrb[34].mxu0 %vm307_vm3, %v233_v41  ;;  %v1260_v41 = vld [vmem:[%s4301_s3 + $0x8] sm:$0xff] }
  0x58   : > { %2675 = vmatprep.mubr.msk.f32.mxu0 %vm307_vm3, %v234_v42  ;;  %v3445_v42 = vld [vmem:[%s4300_s2] ss:$0 sm:$0xff] }
  0x5b   : > { %2676 = vmatmul.mubr.msk.f32.gmra.mrb[36].mxu0 %vm307_vm3, %v235_v43 }
  0x5c   : > { %2678 = vmatprep.mubr.msk.f32.mxu0 %vm307_vm3, %v236_v44 }
  0x5f   : > { %2679 = vmatmul.mubr.msk.f32.gmra.mrb[38].mxu0 %vm307_vm3, %v237_v45 }
  0x60   : > { %2681 = vmatprep.mubr.msk.f32.mxu0 %vm307_vm3, %v238_v46 }
  0x63   : > { %2682 = vmatmul.mubr.msk.f32.gmra.mrb[40].mxu0 %vm307_vm3, %v239_v47 }
  0x64   : > { %2684 = vmatprep.mubr.msk.f32.mxu0 %vm307_vm3, %v240_v48 }
  0x67   : > { %2685 = vmatmul.mubr.msk.f32.gmra.mrb[42].mxu0 %vm307_vm3, %v241_v49 }
  0x68   : > { %2687 = vmatprep.mubr.msk.f32.mxu0 %vm307_vm3, %v242_v50 }
  0x6b   : > { %2688 = vmatmul.mubr.msk.f32.gmra.mrb[44].mxu0 %vm307_vm3, %v243_v51 }
  0x6c   : > { %2690 = vmatprep.mubr.msk.f32.mxu0 %vm307_vm3, %v244_v52  ;;  %v1311_v52 = vld [vmem:[%s4301_s3 + $0x1a0] sm:$0xff] }
  0x6d   : > { %1799 = vmatprep.mubr.f32.mxu1 %v1311_v52 }
  0x6f   : > { %2691 = vmatmul.mubr.msk.f32.gmra.mrb[46].mxu0 %vm307_vm3, %v245_v53 }
  0x70   : > { %2693 = vmatprep.mubr.msk.f32.mxu0 %vm307_vm3, %v246_v54 }
  0x73   : > { %2694 = vmatmul.mubr.msk.f32.gmra.mrb[48].mxu0 %vm307_vm3, %v247_v56 }
  0x74   : > { %2696 = vmatprep.mubr.msk.f32.mxu0 %vm307_vm3, %v248_v57 }
  0x77   : > { %2697 = vmatmul.mubr.msk.f32.gmra.mrb[50].mxu0 %vm307_vm3, %v249_v58 }
  0x78   : > { %2699 = vmatprep.mubr.msk.f32.mxu0 %vm307_vm3, %v250_v59 }
  0x7b   : > { %2700 = vmatmul.mubr.msk.f32.gmra.mrb[52].mxu0 %vm307_vm3, %v251_v60 }
  0x7c   : > { %2702 = vmatprep.mubr.msk.f32.mxu0 %vm307_vm3, %v252_v61 }
  0x7f   : > { %2703 = vmatmul.mubr.msk.f32.gmra.mrb[54].mxu0 %vm307_vm3, %v253_v62 }
  0x80   : > { %2705 = vmatprep.mubr.msk.f32.mxu0 %vm307_vm3, %v254_v63 }
  0x83   : > { %2706 = vmatmul.mubr.msk.f32.gmra.mrb[56].mxu0 %vm307_vm3, %v255_v0 }
  0x84   : > { %2708 = vmatprep.mubr.msk.f32.mxu0 %vm307_vm3, %v256_v1 }
  0x87   : > { %2709 = vmatmul.mubr.msk.f32.gmra.mrb[58].mxu0 %vm307_vm3, %v257_v2 }
  0x88   : > { %2711 = vmatprep.mubr.msk.f32.mxu0 %vm307_vm3, %v258_v3 }
  0x8b   : > { %2712 = vmatmul.mubr.msk.f32.gmra.mrb[60].mxu0 %vm307_vm3, %v259_v4 }
  0x8c   : > { %2714 = vmatprep.mubr.msk.f32.mxu0 %vm307_vm3, %v260_v5 }
  0x8f   : > { %2715 = vmatmul.mubr.msk.f32.gmra.mrb[62].mxu0 %vm307_vm3, %v261_v6 }
  0x90   : > { %2717 = vmatprep.mubr.msk.f32.mxu0 %vm307_vm3, %v262_v7 }
  0x93   : > { %2718 = vmatmul.mubr.msk.f32.gmra.mrb[64].mxu0 %vm307_vm3, %v263_v8 }
  0x94   : > { %2720 = vmatprep.mubr.msk.f32.mxu0 %vm307_vm3, %v264_v9 }
  0x97   : > { %2721 = vmatmul.mubr.msk.f32.gmra.mrb[66].mxu0 %vm307_vm3, %v265_v10 }
  0x98   : > { %2723 = vmatprep.mubr.msk.f32.mxu0 %vm307_vm3, %v266_v11 }
  0x9b   : > { %2724 = vmatmul.mubr.msk.f32.gmra.mrb[68].mxu0 %vm307_vm3, %v267_v12 }
  0x9c   : > { %2726 = vmatprep.mubr.msk.f32.mxu0 %vm307_vm3, %v268_v13 }
  0x9f   : > { %2727 = vmatmul.mubr.msk.f32.gmra.mrb[70].mxu0 %vm307_vm3, %v269_v14 }
  0xa0   : > { %2729 = vmatprep.mubr.msk.f32.mxu0 %vm307_vm3, %v270_v15 }
  0xa3   : > { %2730 = vmatmul.mubr.msk.f32.gmra.mrb[72].mxu0 %vm307_vm3, %v271_v16 }
  0xa4   : > { %2732 = vmatprep.mubr.msk.f32.mxu0 %vm307_vm3, %v272_v17 }
  0xa7   : > { %2733 = vmatmul.mubr.msk.f32.gmra.mrb[74].mxu0 %vm307_vm3, %v273_v18 }
  0xa8   : > { %2735 = vmatprep.mubr.msk.f32.mxu0 %vm307_vm3, %v274_v19 }
  0xab   : > { %2736 = vmatmul.mubr.msk.f32.gmra.mrb[76].mxu0 %vm307_vm3, %v275_v20 }
  0xac   : > { %2738 = vmatprep.mubr.msk.f32.mxu0 %vm307_vm3, %v276_v21 }
  0xaf   : > { %2739 = vmatmul.mubr.msk.f32.gmra.mrb[78].mxu0 %vm307_vm3, %v277_v22 }
  0xb0   : > { %2741 = vmatprep.mubr.msk.f32.mxu0 %vm307_vm3, %v278_v23 }
  0xb3   : > { %2742 = vmatmul.mubr.msk.f32.gmra.mrb[80].mxu0 %vm307_vm3, %v279_v24 }
  0xb4   : > { %2744 = vmatprep.mubr.msk.f32.mxu0 %vm307_vm3, %v280_v25 }
  0xb7   : > { %2745 = vmatmul.mubr.msk.f32.gmra.mrb[82].mxu0 %vm307_vm3, %v281_v26 }
  0xb8   : > { %2747 = vmatprep.mubr.msk.f32.mxu0 %vm307_vm3, %v282_v27 }
  0xbb   : > { %2748 = vmatmul.mubr.msk.f32.gmra.mrb[84].mxu0 %vm307_vm3, %v283_v28 }
  0xbc   : > { %2750 = vmatprep.mubr.msk.f32.mxu0 %vm307_vm3, %v284_v29 }
  0xbf   : > { %2751 = vmatmul.mubr.msk.f32.gmra.mrb[86].mxu0 %vm307_vm3, %v285_v30 }
  0xc0   : > { %2753 = vmatprep.mubr.msk.f32.mxu0 %vm307_vm3, %v286_v31 }
  0xc3   : > { %2754 = vmatmul.mubr.msk.f32.gmra.mrb[88].mxu0 %vm307_vm3, %v287_v32 }
  0xc4   : > { %2756 = vmatprep.mubr.msk.f32.mxu0 %vm307_vm3, %v288_v33 }
  0xc7   : > { %2757 = vmatmul.mubr.msk.f32.gmra.mrb[90].mxu0 %vm307_vm3, %v289_v34 }
  0xc8   : > { %2759 = vmatprep.mubr.msk.f32.mxu0 %vm307_vm3, %v290_v35 }
  0xcb   : > { %2760 = vmatmul.mubr.msk.f32.gmra.mrb[92].mxu0 %vm307_vm3, %v291_v36 }
  0xcc   : > { %2762 = vmatprep.mubr.msk.f32.mxu0 %vm307_vm3, %v292_v37 }
  0xcf   : > { %2763 = vmatmul.mubr.msk.f32.gmra.mrb[94].mxu0 %vm307_vm3, %v293_v38 }
  0xd0   : > { %2765 = vmatprep.mubr.msk.f32.mxu0 %vm307_vm3, %v294_v39 }
  0xd3   : > { %2766 = vmatmul.mubr.msk.f32.gmra.mrb[96].mxu0 %vm307_vm3, %v295_v40 }
  0xd4   : > { %1574 = vmatprep.mubr.f32.mxu0 %v1260_v41 }
  0xe6   : > { %v2623_v43 = vpop.f32.mrb[0].mxu0 }
  0xe7   : > { %v678_v44 = vadd.f32 %v2623_v43, %v3445_v42  ;;  %v672_v45 = vpop.f32.mrb[1].mxu0 }
  0xe8   : > { %v673_v46 = vadd.f32 %v3445_v42, %v672_v45 }
  0xe9   : > { %v1162_v47 = vmax.f32 %v678_v44, 0.0 }
  0xea   : > { %v1161_v48 = vmax.f32 %v673_v46, 0.0  ;;  %v2626_v49 = vpop.f32.mrb[2].mxu0 }
  0xeb   : > { %v688_v50 = vadd.f32 %v2626_v49, %v3445_v42  ;;  %v682_v51 = vpop.f32.mrb[3].mxu0 }
  0xec   : > { %v2858_v53 = vpack.c.bf16 %v1162_v47, %v1161_v48  ;;  %v683_v54 = vadd.f32 %v3445_v42, %v682_v51 }
  0xed   : > { %v1164_v56 = vmax.f32 %v688_v50, 0.0 }
  0xee   : > { %v1163_v57 = vmax.f32 %v683_v54, 0.0  ;;  %v2629_v58 = vpop.f32.mrb[4].mxu0  ;;  %2859 = vmatpush1.bf16.msra.mxu0 %v2858_v53 }
  0xef   : > { %v698_v59 = vadd.f32 %v2629_v58, %v3445_v42  ;;  %v692_v60 = vpop.f32.mrb[5].mxu0  ;;  %2860 = vmatprep.subr.bf16.mxu0 %v3185_v55 }
  0xf0   : > { %v2861_v61 = vpack.c.bf16 %v1164_v56, %v1163_v57  ;;  %v693_v62 = vadd.f32 %v3445_v42, %v692_v60 }
  0xf1   : > { %v1166_v63 = vmax.f32 %v698_v59, 0.0 }
  0xf2   : > { %v1165_v0 = vmax.f32 %v693_v62, 0.0  ;;  %v2632_v1 = vpop.f32.mrb[6].mxu0  ;;  %2862 = vmatpush1.bf16.msra.mxu0 %v2861_v61 }
  0xf3   : > { %v708_v2 = vadd.f32 %v2632_v1, %v3445_v42  ;;  %v702_v3 = vpop.f32.mrb[7].mxu0  ;;  %2863 = vmatprep.subr.bf16.mxu0 %v3185_v55 }
  0xf4   : > { %v2864_v4 = vpack.c.bf16 %v1166_v63, %v1165_v0  ;;  %v703_v5 = vadd.f32 %v3445_v42, %v702_v3 }
  0xf5   : > { %v1168_v6 = vmax.f32 %v708_v2, 0.0 }
  0xf6   : > { %v1167_v7 = vmax.f32 %v703_v5, 0.0  ;;  %v2635_v8 = vpop.f32.mrb[8].mxu0  ;;  %2865 = vmatpush1.bf16.msra.mxu0 %v2864_v4 }
  0xf7   : > { %v718_v9 = vadd.f32 %v2635_v8, %v3445_v42  ;;  %v712_v10 = vpop.f32.mrb[9].mxu0  ;;  %2866 = vmatprep.subr.bf16.mxu0 %v3185_v55 }
  0xf8   : > { %v2867_v11 = vpack.c.bf16 %v1168_v6, %v1167_v7  ;;  %v713_v12 = vadd.f32 %v3445_v42, %v712_v10 }
  0xf9   : > { %v1170_v13 = vmax.f32 %v718_v9, 0.0 }
  0xfa   : > { %v1169_v14 = vmax.f32 %v713_v12, 0.0  ;;  %v2638_v15 = vpop.f32.mrb[10].mxu0  ;;  %2868 = vmatpush1.bf16.msra.mxu0 %v2867_v11 }
  0xfb   : > { %v728_v16 = vadd.f32 %v2638_v15, %v3445_v42  ;;  %v722_v17 = vpop.f32.mrb[11].mxu0  ;;  %2869 = vmatprep.subr.bf16.mxu0 %v3185_v55 }
  0xfc   : > { %v2870_v18 = vpack.c.bf16 %v1170_v13, %v1169_v14  ;;  %v723_v19 = vadd.f32 %v3445_v42, %v722_v17 }
  0xfd   : > { %v1172_v20 = vmax.f32 %v728_v16, 0.0 }
  0xfe   : > { %v1171_v21 = vmax.f32 %v723_v19, 0.0  ;;  %v2641_v22 = vpop.f32.mrb[12].mxu0  ;;  %2871 = vmatpush1.bf16.msra.mxu0 %v2870_v18 }
  0xff   : > { %v738_v23 = vadd.f32 %v2641_v22, %v3445_v42  ;;  %v732_v24 = vpop.f32.mrb[13].mxu0  ;;  %2872 = vmatprep.subr.bf16.mxu0 %v3185_v55 }
 0x100   : > { %v2873_v25 = vpack.c.bf16 %v1172_v20, %v1171_v21  ;;  %v733_v26 = vadd.f32 %v3445_v42, %v732_v24 }
 0x101   : > { %v1174_v27 = vmax.f32 %v738_v23, 0.0 }
 0x102   : > { %v1173_v28 = vmax.f32 %v733_v26, 0.0  ;;  %v2644_v29 = vpop.f32.mrb[14].mxu0  ;;  %2874 = vmatpush1.bf16.msra.mxu0 %v2873_v25 }
 0x103   : > { %v748_v30 = vadd.f32 %v2644_v29, %v3445_v42  ;;  %v742_v31 = vpop.f32.mrb[15].mxu0  ;;  %2875 = vmatprep.subr.bf16.mxu0 %v3185_v55 }
 0x104   : > { %v2876_v32 = vpack.c.bf16 %v1174_v27, %v1173_v28  ;;  %v743_v33 = vadd.f32 %v3445_v42, %v742_v31 }
 0x105   : > { %v1176_v34 = vmax.f32 %v748_v30, 0.0 }
 0x106   : > { %v1175_v35 = vmax.f32 %v743_v33, 0.0  ;;  %v2647_v36 = vpop.f32.mrb[16].mxu0  ;;  %2877 = vmatpush1.bf16.msra.mxu0 %v2876_v32 }
 0x107   : > { %v758_v37 = vadd.f32 %v2647_v36, %v3445_v42  ;;  %v752_v38 = vpop.f32.mrb[17].mxu0  ;;  %2878 = vmatprep.subr.bf16.mxu0 %v3185_v55 }
 0x108   : > { %v2879_v39 = vpack.c.bf16 %v1176_v34, %v1175_v35  ;;  %v753_v40 = vadd.f32 %v3445_v42, %v752_v38  ;;  %v1259_v38 = vld [vmem:[%s4301_s3] sm:$0xff] }
 0x109   : > { %v1178_v41 = vmax.f32 %v758_v37, 0.0 }
 0x10a   : > { %v1177_v43 = vmax.f32 %v753_v40, 0.0  ;;  %v2650_v44 = vpop.f32.mrb[18].mxu0  ;;  %2880 = vmatpush1.bf16.msra.mxu0 %v2879_v39 }
 0x10b   : > { %v768_v45 = vadd.f32 %v2650_v44, %v3445_v42  ;;  %v762_v46 = vpop.f32.mrb[19].mxu0  ;;  %2881 = vmatprep.subr.bf16.mxu0 %v3185_v55 }
 0x10c   : > { %v2882_v47 = vpack.c.bf16 %v1178_v41, %v1177_v43  ;;  %v763_v48 = vadd.f32 %v3445_v42, %v762_v46 }
 0x10d   : > { %v1180_v49 = vmax.f32 %v768_v45, 0.0  ;;  %v1267_v45 = vld [vmem:[%s4301_s3 + $0x40] sm:$0xff] }
 0x10e   : > { %v1179_v50 = vmax.f32 %v763_v48, 0.0  ;;  %v2653_v51 = vpop.f32.mrb[20].mxu0  ;;  %2883 = vmatpush1.bf16.msra.mxu0 %v2882_v47  ;;  %v1266_v48 = vld [vmem:[%s4301_s3 + $0x38] sm:$0xff] }
 0x10f   : > { %v778_v52 = vadd.f32 %v2653_v51, %v3445_v42  ;;  %v772_v53 = vpop.f32.mrb[21].mxu0  ;;  %2884 = vmatprep.subr.bf16.mxu0 %v3185_v55 }
 0x110   : > { %v2885_v54 = vpack.c.bf16 %v1180_v49, %v1179_v50  ;;  %v773_v56 = vadd.f32 %v3445_v42, %v772_v53 }
 0x111   : > { %v1182_v57 = vmax.f32 %v778_v52, 0.0 }
 0x112   : > { %v1181_v58 = vmax.f32 %v773_v56, 0.0  ;;  %v2656_v59 = vpop.f32.mrb[22].mxu0  ;;  %2886 = vmatpush1.bf16.msra.mxu0 %v2885_v54  ;;  %v1274_v54 = vld [vmem:[%s4301_s3 + $0x78] sm:$0xff] }
 0x113   : > { %v788_v60 = vadd.f32 %v2656_v59, %v3445_v42  ;;  %v782_v61 = vpop.f32.mrb[23].mxu0  ;;  %2887 = vmatprep.subr.bf16.mxu0 %v3185_v55 }
 0x114   : > { %v2888_v62 = vpack.c.bf16 %v1182_v57, %v1181_v58  ;;  %v783_v63 = vadd.f32 %v3445_v42, %v782_v61  ;;  %v1273_v58 = vld [vmem:[%s4301_s3 + $0x70] sm:$0xff] }
 0x115   : > { %v1184_v0 = vmax.f32 %v788_v60, 0.0 }
 0x116   : > { %v1183_v1 = vmax.f32 %v783_v63, 0.0  ;;  %v2659_v2 = vpop.f32.mrb[24].mxu0  ;;  %2889 = vmatpush1.bf16.msra.mxu0 %v2888_v62 }
 0x117   : > { %v798_v3 = vadd.f32 %v2659_v2, %v3445_v42  ;;  %v792_v4 = vpop.f32.mrb[25].mxu0  ;;  %2890 = vmatprep.subr.bf16.mxu0 %v3185_v55 }
 0x118   : > { %v2891_v5 = vpack.c.bf16 %v1184_v0, %v1183_v1  ;;  %v793_v6 = vadd.f32 %v3445_v42, %v792_v4  ;;  %v1281_v0 = vld [vmem:[%s4301_s3 + $0xb0] sm:$0xff] }
 0x119   : > { %v1186_v7 = vmax.f32 %v798_v3, 0.0  ;;  %v1280_v3 = vld [vmem:[%s4301_s3 + $0xa8] sm:$0xff] }
 0x11a   : > { %v1185_v8 = vmax.f32 %v793_v6, 0.0  ;;  %v2662_v9 = vpop.f32.mrb[26].mxu0  ;;  %2892 = vmatpush1.bf16.msra.mxu0 %v2891_v5 }
 0x11b   : > { %v808_v10 = vadd.f32 %v2662_v9, %v3445_v42  ;;  %v802_v11 = vpop.f32.mrb[27].mxu0  ;;  %2893 = vmatprep.subr.bf16.mxu0 %v3185_v55  ;;  %v1288_v9 = vld [vmem:[%s4301_s3 + $0xe8] sm:$0xff] }
 0x11c   : > { %v2894_v12 = vpack.c.bf16 %v1186_v7, %v1185_v8  ;;  %v803_v13 = vadd.f32 %v3445_v42, %v802_v11 }
 0x11d   : > { %v1188_v14 = vmax.f32 %v808_v10, 0.0 }
 0x11e   : > { %v1187_v15 = vmax.f32 %v803_v13, 0.0  ;;  %v2665_v16 = vpop.f32.mrb[28].mxu0  ;;  %2895 = vmatpush1.bf16.msra.mxu0 %v2894_v12  ;;  %v1287_v12 = vld [vmem:[%s4301_s3 + $0xe0] sm:$0xff] }
 0x11f   : > { %v818_v17 = vadd.f32 %v2665_v16, %v3445_v42  ;;  %v812_v18 = vpop.f32.mrb[29].mxu0  ;;  %2896 = vmatprep.subr.bf16.mxu0 %v3185_v55 }
 0x120   : > { %v2897_v19 = vpack.c.bf16 %v1188_v14, %v1187_v15  ;;  %v813_v20 = vadd.f32 %v3445_v42, %v812_v18  ;;  %v1295_v18 = vld [vmem:[%s4301_s3 + $0x120] sm:$0xff] }
 0x121   : > { %v1190_v21 = vmax.f32 %v818_v17, 0.0 }
 0x122   : > { %v1189_v22 = vmax.f32 %v813_v20, 0.0  ;;  %v2668_v23 = vpop.f32.mrb[30].mxu0  ;;  %2898 = vmatpush1.bf16.msra.mxu0 %v2897_v19 }
 0x123   : > { %v828_v24 = vadd.f32 %v2668_v23, %v3445_v42  ;;  %v822_v25 = vpop.f32.mrb[31].mxu0  ;;  %2899 = vmatprep.subr.bf16.mxu0 %v3185_v55 }
 0x124   : > { %v2900_v26 = vpack.c.bf16 %v1190_v21, %v1189_v22  ;;  %v823_v27 = vadd.f32 %v3445_v42, %v822_v25  ;;  %v1294_v21 = vld [vmem:[%s4301_s3 + $0x118] sm:$0xff] }
 0x125   : > { %v1192_v28 = vmax.f32 %v828_v24, 0.0 }
 0x126   : > { %v1191_v29 = vmax.f32 %v823_v27, 0.0  ;;  %v2671_v30 = vpop.f32.mrb[32].mxu0  ;;  %2901 = vmatpush1.bf16.msra.mxu0 %v2900_v26  ;;  %v1302_v27 = vld [vmem:[%s4301_s3 + $0x158] sm:$0xff] }
 0x127   : > { %v838_v31 = vadd.f32 %v2671_v30, %v3445_v42  ;;  %v832_v32 = vpop.f32.mrb[33].mxu0  ;;  %2902 = vmatprep.subr.bf16.mxu0 %v3185_v55  ;;  %v1301_v30 = vld [vmem:[%s4301_s3 + $0x150] sm:$0xff] }
 0x128   : > { %v2903_v33 = vpack.c.bf16 %v1192_v28, %v1191_v29  ;;  %v833_v34 = vadd.f32 %v3445_v42, %v832_v32 }
 0x129   : > { %v1194_v35 = vmax.f32 %v838_v31, 0.0 }
 0x12a   : > { %v1193_v36 = vmax.f32 %v833_v34, 0.0  ;;  %v2674_v37 = vpop.f32.mrb[34].mxu0  ;;  %2904 = vmatpush1.bf16.msra.mxu0 %v2903_v33 }
 0x12b   : > { %v848_v39 = vadd.f32 %v2674_v37, %v3445_v42  ;;  %v842_v40 = vpop.f32.mrb[35].mxu0  ;;  %2905 = vmatprep.subr.bf16.mxu0 %v3185_v55 }
 0x12c   : > { %v2906_v41 = vpack.c.bf16 %v1194_v35, %v1193_v36  ;;  %v843_v43 = vadd.f32 %v3445_v42, %v842_v40  ;;  %v1309_v36 = vld [vmem:[%s4301_s3 + $0x190] sm:$0xff] }
 0x12d   : > { %v1196_v44 = vmax.f32 %v848_v39, 0.0  ;;  %1575 = vmatmul.mubr.f32.vlgmr.msra.gmra.mrb[98].mxu0 %v1259_v38  ;;  %v1308_v39 = vld [vmem:[%s4301_s3 + $0x188] sm:$0xff] }
 0x12e   : > { %v1195_v46 = vmax.f32 %v843_v43, 0.0  ;;  %v2677_v47 = vpop.f32.mrb[36].mxu0  ;;  %2907 = vmatpush1.bf16.msra.mxu0 %v2906_v41  ;;  %3020 = vmatpush1.bf16.msra.mxu1 %v2906_v41 }
 0x12f   : > { %v858_v49 = vadd.f32 %v2677_v47, %v3445_v42  ;;  %v852_v50 = vpop.f32.mrb[37].mxu0  ;;  %2908 = vmatprep.subr.bf16.mxu0 %v3185_v55  ;;  %3005 = vmatprep.subr.bf16.mxu1 %v3185_v55 }
 0x130   : > { %v2909_v51 = vpack.c.bf16 %v1196_v44, %v1195_v46  ;;  %v853_v52 = vadd.f32 %v3445_v42, %v852_v50  ;;  %1579 = vmatprep.mubr.f32.mxu0 %v1267_v45  ;;  %v1316_v46 = vld [vmem:[%s4301_s3 + $0x1c8] sm:$0xff] }
 0x131   : > { %v1198_v53 = vmax.f32 %v858_v49, 0.0  ;;  %1580 = vmatmul.mubr.f32.gmra.mrb[100].mxu0 %v1266_v48  ;;  %v1315_v49 = vld [vmem:[%s4301_s3 + $0x1c0] sm:$0xff] }
 0x132   : > { %v1197_v56 = vmax.f32 %v853_v52, 0.0  ;;  %v2680_v57 = vpop.f32.mrb[38].mxu0  ;;  %2910 = vmatpush1.bf16.msra.mxu0 %v2909_v51  ;;  %3021 = vmatpush1.bf16.msra.mxu1 %v2909_v51 }
 0x133   : > { %v868_v59 = vadd.f32 %v2680_v57, %v3445_v42  ;;  %v862_v60 = vpop.f32.mrb[39].mxu0  ;;  %2911 = vmatprep.subr.bf16.mxu0 %v3185_v55  ;;  %3006 = vmatprep.subr.bf16.mxu1 %v3185_v55 }
 0x134   : > { %v2912_v61 = vpack.c.bf16 %v1198_v53, %v1197_v56  ;;  %v863_v62 = vadd.f32 %v3445_v42, %v862_v60  ;;  %1584 = vmatprep.mubr.f32.mxu0 %v1274_v54  ;;  %v1323_v56 = vld [vmem:[%s4301_s3 + $0x200] sm:$0xff] }
 0x135   : > { %v1200_v63 = vmax.f32 %v868_v59, 0.0  ;;  %1585 = vmatmul.mubr.f32.gmra.mrb[102].mxu0 %v1273_v58  ;;  %v1322_v59 = vld [vmem:[%s4301_s3 + $0x1f8] sm:$0xff] }
 0x136   : > { %v1199_v1 = vmax.f32 %v863_v62, 0.0  ;;  %v2683_v2 = vpop.f32.mrb[40].mxu0  ;;  %2913 = vmatpush1.bf16.msra.mxu0 %v2912_v61  ;;  %3022 = vmatpush1.bf16.msra.mxu1 %v2912_v61 }
 0x137   : > { %v878_v4 = vadd.f32 %v2683_v2, %v3445_v42  ;;  %v872_v5 = vpop.f32.mrb[41].mxu0  ;;  %2914 = vmatprep.subr.bf16.mxu0 %v3185_v55  ;;  %3007 = vmatprep.subr.bf16.mxu1 %v3185_v55 }
 0x138   : > { %v2915_v6 = vpack.c.bf16 %v1200_v63, %v1199_v1  ;;  %v873_v7 = vadd.f32 %v3445_v42, %v872_v5  ;;  %1589 = vmatprep.mubr.f32.mxu0 %v1281_v0  ;;  %v1330_v1 = vld [vmem:[%s4301_s3 + $0x238] sm:$0xff] }
 0x139   : > { %v1202_v8 = vmax.f32 %v878_v4, 0.0  ;;  %1590 = vmatmul.mubr.f32.gmra.mrb[104].mxu0 %v1280_v3  ;;  %v1329_v4 = vld [vmem:[%s4301_s3 + $0x230] sm:$0xff] }
 0x13a   : > { %v1201_v10 = vmax.f32 %v873_v7, 0.0  ;;  %v2686_v11 = vpop.f32.mrb[42].mxu0  ;;  %2916 = vmatpush1.bf16.msra.mxu0 %v2915_v6  ;;  %3023 = vmatpush1.bf16.msra.mxu1 %v2915_v6 }
 0x13b   : > { %v888_v13 = vadd.f32 %v2686_v11, %v3445_v42  ;;  %v882_v14 = vpop.f32.mrb[43].mxu0  ;;  %2917 = vmatprep.subr.bf16.mxu0 %v3185_v55  ;;  %3008 = vmatprep.subr.bf16.mxu1 %v3185_v55 }
 0x13c   : > { %v2918_v15 = vpack.c.bf16 %v1202_v8, %v1201_v10  ;;  %v883_v16 = vadd.f32 %v3445_v42, %v882_v14  ;;  %1594 = vmatprep.mubr.f32.mxu0 %v1288_v9  ;;  %v1337_v10 = vld [vmem:[%s4301_s3 + $0x270] sm:$0xff] }
 0x13d   : > { %v1204_v17 = vmax.f32 %v888_v13, 0.0  ;;  %1595 = vmatmul.mubr.f32.gmra.mrb[106].mxu0 %v1287_v12  ;;  %v1336_v13 = vld [vmem:[%s4301_s3 + $0x268] sm:$0xff] }
 0x13e   : > { %v1203_v19 = vmax.f32 %v883_v16, 0.0  ;;  %v2689_v20 = vpop.f32.mrb[44].mxu0  ;;  %2919 = vmatpush1.bf16.msra.mxu0 %v2918_v15  ;;  %3024 = vmatpush1.bf16.msra.mxu1 %v2918_v15 }
 0x13f   : > { %v898_v22 = vadd.f32 %v2689_v20, %v3445_v42  ;;  %v892_v23 = vpop.f32.mrb[45].mxu0  ;;  %2920 = vmatprep.subr.bf16.mxu0 %v3185_v55  ;;  %3009 = vmatprep.subr.bf16.mxu1 %v3185_v55 }
 0x140   : > { %v2921_v24 = vpack.c.bf16 %v1204_v17, %v1203_v19  ;;  %v893_v25 = vadd.f32 %v3445_v42, %v892_v23  ;;  %1599 = vmatprep.mubr.f32.mxu0 %v1295_v18  ;;  %v1344_v19 = vld [vmem:[%s4301_s3 + $0x2a8] sm:$0xff] }
 0x141   : > { %v1206_v26 = vmax.f32 %v898_v22, 0.0  ;;  %1600 = vmatmul.mubr.f32.gmra.mrb[108].mxu0 %v1294_v21  ;;  %v1343_v22 = vld [vmem:[%s4301_s3 + $0x2a0] sm:$0xff] }
 0x142   : > { %v1205_v28 = vmax.f32 %v893_v25, 0.0  ;;  %v2692_v29 = vpop.f32.mrb[46].mxu0  ;;  %2922 = vmatpush1.bf16.msra.mxu0 %v2921_v24  ;;  %3025 = vmatpush1.bf16.msra.mxu1 %v2921_v24 }
 0x143   : > { %v908_v31 = vadd.f32 %v2692_v29, %v3445_v42  ;;  %v902_v32 = vpop.f32.mrb[47].mxu0  ;;  %2923 = vmatprep.subr.bf16.mxu0 %v3185_v55  ;;  %3010 = vmatprep.subr.bf16.mxu1 %v3185_v55 }
 0x144   : > { %v2924_v33 = vpack.c.bf16 %v1206_v26, %v1205_v28  ;;  %v903_v34 = vadd.f32 %v3445_v42, %v902_v32  ;;  %1604 = vmatprep.mubr.f32.mxu0 %v1302_v27  ;;  %v1351_v28 = vld [vmem:[%s4301_s3 + $0x2e0] sm:$0xff] }
 0x145   : > { %v1208_v35 = vmax.f32 %v908_v31, 0.0  ;;  %1605 = vmatmul.mubr.f32.gmra.mrb[110].mxu0 %v1301_v30  ;;  %v1350_v31 = vld [vmem:[%s4301_s3 + $0x2d8] sm:$0xff] }
 0x146   : > { %v1207_v37 = vmax.f32 %v903_v34, 0.0  ;;  %v2695_v38 = vpop.f32.mrb[48].mxu0  ;;  %2925 = vmatpush1.bf16.msra.mxu0 %v2924_v33  ;;  %3026 = vmatpush1.bf16.msra.mxu1 %v2924_v33 }
 0x147   : > { %v918_v40 = vadd.f32 %v2695_v38, %v3445_v42  ;;  %v912_v41 = vpop.f32.mrb[49].mxu0  ;;  %2926 = vmatprep.subr.bf16.mxu0 %v3185_v55  ;;  %3011 = vmatprep.subr.bf16.mxu1 %v3185_v55 }
 0x148   : > { %v2927_v43 = vpack.c.bf16 %v1208_v35, %v1207_v37  ;;  %v913_v44 = vadd.f32 %v3445_v42, %v912_v41  ;;  %1609 = vmatprep.mubr.f32.mxu0 %v1309_v36  ;;  %v1358_v37 = vld [vmem:[%s4301_s3 + $0x318] sm:$0xff] }
 0x149   : > { %v1210_v45 = vmax.f32 %v918_v40, 0.0  ;;  %1610 = vmatmul.mubr.f32.gmra.mrb[112].mxu0 %v1308_v39  ;;  %v1357_v40 = vld [vmem:[%s4301_s3 + $0x310] sm:$0xff] }
 0x14a   : > { %v1209_v47 = vmax.f32 %v913_v44, 0.0  ;;  %v2698_v48 = vpop.f32.mrb[50].mxu0  ;;  %2928 = vmatpush1.bf16.msra.mxu0 %v2927_v43  ;;  %3027 = vmatpush1.bf16.msra.mxu1 %v2927_v43 }
 0x14b   : > { %v928_v50 = vadd.f32 %v2698_v48, %v3445_v42  ;;  %v922_v51 = vpop.f32.mrb[51].mxu0  ;;  %2929 = vmatprep.subr.bf16.mxu0 %v3185_v55  ;;  %3012 = vmatprep.subr.bf16.mxu1 %v3185_v55 }
 0x14c   : > { %v2930_v52 = vpack.c.bf16 %v1210_v45, %v1209_v47  ;;  %v923_v53 = vadd.f32 %v3445_v42, %v922_v51  ;;  %1614 = vmatprep.mubr.f32.mxu0 %v1316_v46  ;;  %v1365_v47 = vld [vmem:[%s4301_s3 + $0x350] sm:$0xff] }
 0x14d   : > { %v1212_v54 = vmax.f32 %v928_v50, 0.0  ;;  %1615 = vmatmul.mubr.f32.gmra.mrb[114].mxu0 %v1315_v49  ;;  %v1364_v50 = vld [vmem:[%s4301_s3 + $0x348] sm:$0xff] }
 0x14e   : > { %v1211_v57 = vmax.f32 %v923_v53, 0.0  ;;  %v2701_v58 = vpop.f32.mrb[52].mxu0  ;;  %2931 = vmatpush1.bf16.msra.mxu0 %v2930_v52  ;;  %3028 = vmatpush1.bf16.msra.mxu1 %v2930_v52 }
 0x14f   : > { %v938_v60 = vadd.f32 %v2701_v58, %v3445_v42  ;;  %v932_v61 = vpop.f32.mrb[53].mxu0  ;;  %2932 = vmatprep.subr.bf16.mxu0 %v3185_v55  ;;  %3013 = vmatprep.subr.bf16.mxu1 %v3185_v55 }
 0x150   : > { %v2933_v62 = vpack.c.bf16 %v1212_v54, %v1211_v57  ;;  %v933_v63 = vadd.f32 %v3445_v42, %v932_v61  ;;  %1619 = vmatprep.mubr.f32.mxu0 %v1323_v56  ;;  %v1372_v56 = vld [vmem:[%s4301_s3 + $0x388] sm:$0xff]  ;;  %v1371_v61 = vld [vmem:[%s4301_s3 + $0x380] sm:$0xff] }
 0x151   : > { %v1214_v0 = vmax.f32 %v938_v60, 0.0  ;;  %1620 = vmatmul.mubr.f32.gmra.mrb[116].mxu0 %v1322_v59  ;;  %v1310_v60 = vld [vmem:[%s4301_s3 + $0x198] sm:$0xff] }
 0x152   : > { %v1213_v2 = vmax.f32 %v933_v63, 0.0  ;;  %v2704_v3 = vpop.f32.mrb[54].mxu0  ;;  %2934 = vmatpush1.bf16.msra.mxu0 %v2933_v62  ;;  %3029 = vmatpush1.bf16.msra.mxu1 %v2933_v62 }
 0x153   : > { %v948_v5 = vadd.f32 %v2704_v3, %v3445_v42  ;;  %v942_v6 = vpop.f32.mrb[55].mxu0  ;;  %2935 = vmatprep.subr.bf16.mxu0 %v3185_v55  ;;  %3014 = vmatprep.subr.bf16.mxu1 %v3185_v55  ;;  %v1379_v3 = vld [vmem:[%s4301_s3 + $0x3c0] sm:$0xff] }
 0x154   : > { %v2936_v7 = vpack.c.bf16 %v1214_v0, %v1213_v2  ;;  %v943_v8 = vadd.f32 %v3445_v42, %v942_v6  ;;  %1624 = vmatprep.mubr.f32.mxu0 %v1330_v1  ;;  %v1318_v0 = vld [vmem:[%s4301_s3 + $0x1d8] sm:$0xff] }
 0x155   : > { %v1216_v9 = vmax.f32 %v948_v5, 0.0  ;;  %1625 = vmatmul.mubr.f32.gmra.mrb[118].mxu0 %v1329_v4 }
 0x156   : > { %v1215_v11 = vmax.f32 %v943_v8, 0.0  ;;  %v2707_v12 = vpop.f32.mrb[56].mxu0  ;;  %2937 = vmatpush1.bf16.msra.mxu0 %v2936_v7  ;;  %3030 = vmatpush1.bf16.msra.mxu1 %v2936_v7  ;;  %v1317_v7 = vld [vmem:[%s4301_s3 + $0x1d0] sm:$0xff]  ;;  %v1378_v8 = vld [vmem:[%s4301_s3 + $0x3b8] sm:$0xff] }
 0x157   : > { %v958_v14 = vadd.f32 %v2707_v12, %v3445_v42  ;;  %v952_v15 = vpop.f32.mrb[57].mxu0  ;;  %2938 = vmatprep.subr.bf16.mxu0 %v3185_v55  ;;  %3015 = vmatprep.subr.bf16.mxu1 %v3185_v55 }
 0x158   : > { %v2939_v16 = vpack.c.bf16 %v1216_v9, %v1215_v11  ;;  %v953_v17 = vadd.f32 %v3445_v42, %v952_v15  ;;  %1629 = vmatprep.mubr.f32.mxu0 %v1337_v10  ;;  %v1325_v11 = vld [vmem:[%s4301_s3 + $0x210] sm:$0xff] }
 0x159   : > { %v1218_v18 = vmax.f32 %v958_v14, 0.0  ;;  %1630 = vmatmul.mubr.f32.gmra.mrb[120].mxu0 %v1336_v13  ;;  %v1386_v14 = vld [vmem:[%s4301_s3 + $0x3f8] sm:$0xff] }
 0x15a   : > { %v1217_v20 = vmax.f32 %v953_v17, 0.0  ;;  %v2710_v21 = vpop.f32.mrb[58].mxu0  ;;  %2940 = vmatpush1.bf16.msra.mxu0 %v2939_v16  ;;  %3031 = vmatpush1.bf16.msra.mxu1 %v2939_v16 }
 0x15b   : > { %v968_v23 = vadd.f32 %v2710_v21, %v3445_v42  ;;  %v962_v24 = vpop.f32.mrb[59].mxu0  ;;  %2941 = vmatprep.subr.bf16.mxu0 %v3185_v55  ;;  %3016 = vmatprep.subr.bf16.mxu1 %v3185_v55 }
 0x15c   : > { %v2942_v25 = vpack.c.bf16 %v1218_v18, %v1217_v20  ;;  %v963_v26 = vadd.f32 %v3445_v42, %v962_v24  ;;  %1634 = vmatprep.mubr.f32.mxu0 %v1344_v19  ;;  %v1324_v18 = vld [vmem:[%s4301_s3 + $0x208] sm:$0xff]  ;;  %v1385_v19 = vld [vmem:[%s4301_s3 + $0x3f0] sm:$0xff] }
 0x15d   : > { %v1220_v27 = vmax.f32 %v968_v23, 0.0  ;;  %1635 = vmatmul.mubr.f32.gmra.mrb[122].mxu0 %v1343_v22  ;;  %v1332_v22 = vld [vmem:[%s4301_s3 + $0x248] sm:$0xff] }
 0x15e   : > { %v1219_v29 = vmax.f32 %v963_v26, 0.0  ;;  %v2713_v30 = vpop.f32.mrb[60].mxu0  ;;  %2943 = vmatpush1.bf16.msra.mxu0 %v2942_v25  ;;  %3032 = vmatpush1.bf16.msra.mxu1 %v2942_v25  ;;  %v1393_v25 = vld [vmem:[%s4301_s3 + $0x430] sm:$0xff] }
 0x15f   : > { %v978_v32 = vadd.f32 %v2713_v30, %v3445_v42  ;;  %v972_v33 = vpop.f32.mrb[61].mxu0  ;;  %2944 = vmatprep.subr.bf16.mxu0 %v3185_v55  ;;  %3017 = vmatprep.subr.bf16.mxu1 %v3185_v55  ;;  %v1392_v30 = vld [vmem:[%s4301_s3 + $0x428] sm:$0xff] }
 0x160   : > { %v2945_v34 = vpack.c.bf16 %v1220_v27, %v1219_v29  ;;  %v973_v35 = vadd.f32 %v3445_v42, %v972_v33  ;;  %1639 = vmatprep.mubr.f32.mxu0 %v1351_v28  ;;  %v1331_v29 = vld [vmem:[%s4301_s3 + $0x240] sm:$0xff] }
 0x161   : > { %v1222_v36 = vmax.f32 %v978_v32, 0.0  ;;  %1640 = vmatmul.mubr.f32.gmra.mrb[124].mxu0 %v1350_v31  ;;  %v1339_v33 = vld [vmem:[%s4301_s3 + $0x280] sm:$0xff] }
 0x162   : > { %v1221_v38 = vmax.f32 %v973_v35, 0.0  ;;  %v2716_v39 = vpop.f32.mrb[62].mxu0  ;;  %2946 = vmatpush1.bf16.msra.mxu0 %v2945_v34  ;;  %3033 = vmatpush1.bf16.msra.mxu1 %v2945_v34 }
 0x163   : > { %v988_v41 = vadd.f32 %v2716_v39, %v3445_v42  ;;  %v982_v43 = vpop.f32.mrb[63].mxu0  ;;  %2947 = vmatprep.subr.bf16.mxu0 %v3185_v55  ;;  %3018 = vmatprep.subr.bf16.mxu1 %v3185_v55 }
 0x164   : > { %v2948_v44 = vpack.c.bf16 %v1222_v36, %v1221_v38  ;;  %v983_v45 = vadd.f32 %v3445_v42, %v982_v43  ;;  %1644 = vmatprep.mubr.f32.mxu0 %v1358_v37  ;;  %v1400_v36 = vld [vmem:[%s4301_s3 + $0x468] sm:$0xff] }
 0x165   : > { %v1224_v46 = vmax.f32 %v988_v41, 0.0  ;;  %1645 = vmatmul.mubr.f32.gmra.mrb[126].mxu0 %v1357_v40  ;;  %v1338_v40 = vld [vmem:[%s4301_s3 + $0x278] sm:$0xff]  ;;  %v1399_v41 = vld [vmem:[%s4301_s3 + $0x460] sm:$0xff] }
 0x166   : > { %v1223_v48 = vmax.f32 %v983_v45, 0.0  ;;  %v2719_v49 = vpop.f32.mrb[64].mxu0  ;;  %2949 = vmatpush1.bf16.msra.mxu0 %v2948_v44  ;;  %3034 = vmatpush1.bf16.msra.mxu1 %v2948_v44  ;;  %v1346_v45 = vld [vmem:[%s4301_s3 + $0x2b8] sm:$0xff] }
 0x167   : > { %v998_v51 = vadd.f32 %v2719_v49, %v3445_v42  ;;  %v992_v52 = vpop.f32.mrb[65].mxu0  ;;  %2950 = vmatprep.subr.bf16.mxu0 %v3185_v55  ;;  %3019 = vmatprep.subr.bf16.mxu1 %v3185_v55 }
 0x168   : > { %v2951_v53 = vpack.c.bf16 %v1224_v46, %v1223_v48  ;;  %v993_v54 = vadd.f32 %v3445_v42, %v992_v52  ;;  %1649 = vmatprep.mubr.f32.mxu0 %v1365_v47  ;;  %v1407_v48 = vld [vmem:[%s4301_s3 + $0x4a0] sm:$0xff]  ;;  %v1345_v52 = vld [vmem:[%s4301_s3 + $0x2b0] sm:$0xff] }
 0x169   : > { %v1226_v57 = vmax.f32 %v998_v51, 0.0  ;;  %1650 = vmatmul.mubr.f32.gmra.mrb[128].mxu0 %v1364_v50 }
 0x16a   : > { %v1225_v58 = vmax.f32 %v993_v54, 0.0  ;;  %v2722_v59 = vpop.f32.mrb[66].mxu0  ;;  %2952 = vmatpush1.bf16.msra.mxu0 %v2951_v53  ;;  %3035 = vmatpush1.bf16.msra.mxu1 %v2951_v53  ;;  %v1406_v53 = vld [vmem:[%s4301_s3 + $0x498] sm:$0xff] }
 0x16b   : > { %v1008_v62 = vadd.f32 %v2722_v59, %v3445_v42  ;;  %v1002_v63 = vpop.f32.mrb[67].mxu0  ;;  %2953 = vmatprep.subr.bf16.mxu1 %v3185_v55  ;;  %1654 = vmatprep.mubr.f32.mxu0 %v1372_v56 }
 0x16c   : > { %v2954_v1 = vpack.c.bf16 %v1226_v57, %v1225_v58  ;;  %v1003_v2 = vadd.f32 %v3445_v42, %v1002_v63  ;;  %v1353_v57 = vld [vmem:[%s4301_s3 + $0x2f0] sm:$0xff] }
 0x16d   : > { %v1228_v4 = vmax.f32 %v1008_v62, 0.0  ;;  %1800 = vmatmul.mubr.f32.vlgmr.msra.gmra.mrb[0].mxu1 %v1310_v60  ;;  %1655 = vmatmul.mubr.f32.gmra.mrb[130].mxu0 %v1371_v61  ;;  %v1414_v60 = vld [vmem:[%s4301_s3 + $0x4d8] sm:$0xff] }
 0x16e   : > { %v1227_v5 = vmax.f32 %v1003_v2, 0.0  ;;  %v2725_v6 = vpop.f32.mrb[68].mxu0  ;;  %2955 = vmatpush1.bf16.msra.mxu1 %v2954_v1  ;;  %1804 = vmatprep.mubr.f32.mxu1 %v1318_v0  ;;  %v1352_v0 = vld [vmem:[%s4301_s3 + $0x2e8] sm:$0xff]  ;;  %v1413_v1 = vld [vmem:[%s4301_s3 + $0x4d0] sm:$0xff] }
 0x16f   : > { %v1018_v9 = vadd.f32 %v2725_v6, %v3445_v42  ;;  %v1012_v10 = vpop.f32.mrb[69].mxu0  ;;  %2956 = vmatprep.subr.bf16.mxu1 %v3185_v55  ;;  %1659 = vmatprep.mubr.f32.mxu0 %v1379_v3 }
 0x170   : > { %v2957_v12 = vpack.c.bf16 %v1228_v4, %v1227_v5  ;;  %v1013_v13 = vadd.f32 %v3445_v42, %v1012_v10  ;;  %v1360_v4 = vld [vmem:[%s4301_s3 + $0x328] sm:$0xff] }
 0x171   : > { %v1230_v15 = vmax.f32 %v1018_v9, 0.0  ;;  %1805 = vmatmul.mubr.f32.gmra.mrb[2].mxu1 %v1317_v7  ;;  %1660 = vmatmul.mubr.f32.gmra.mrb[132].mxu0 %v1378_v8  ;;  %v1421_v7 = vld [vmem:[%s4301_s3 + $0x510] sm:$0xff] }
 0x172   : > { %v1229_v16 = vmax.f32 %v1013_v13, 0.0  ;;  %2958 = vmatpush1.bf16.msra.mxu1 %v2957_v12  ;;  %v2728_v17 = vpop.f32.mrb[70].mxu0  ;;  %1809 = vmatprep.mubr.f32.mxu1 %v1325_v11  ;;  %v1359_v11 = vld [vmem:[%s4301_s3 + $0x320] sm:$0xff]  ;;  %v1420_v12 = vld [vmem:[%s4301_s3 + $0x508] sm:$0xff] }
 0x173   : > { %v1028_v20 = vadd.f32 %v2728_v17, %v3445_v42  ;;  %v1022_v21 = vpop.f32.mrb[71].mxu0  ;;  %2959 = vmatprep.subr.bf16.mxu1 %v3185_v55  ;;  %1664 = vmatprep.mubr.f32.mxu0 %v1386_v14 }
 0x174   : > { %v2960_v23 = vpack.c.bf16 %v1230_v15, %v1229_v16  ;;  %v1023_v24 = vadd.f32 %v3445_v42, %v1022_v21  ;;  %v1367_v15 = vld [vmem:[%s4301_s3 + $0x360] sm:$0xff]  ;;  %v1366_v21 = vld [vmem:[%s4301_s3 + $0x358] sm:$0xff] }
 0x175   : > { %v1232_v26 = vmax.f32 %v1028_v20, 0.0  ;;  %1810 = vmatmul.mubr.f32.gmra.mrb[4].mxu1 %v1324_v18  ;;  %1665 = vmatmul.mubr.f32.gmra.mrb[134].mxu0 %v1385_v19  ;;  %v1428_v18 = vld [vmem:[%s4301_s3 + $0x548] sm:$0xf] }
 0x176   : > { %v1231_v27 = vmax.f32 %v1023_v24, 0.0  ;;  %2961 = vmatpush1.bf16.msra.mxu1 %v2960_v23  ;;  %v2731_v28 = vpop.f32.mrb[72].mxu0  ;;  %1814 = vmatprep.mubr.f32.mxu1 %v1332_v22  ;;  %v1427_v23 = vld [vmem:[%s4301_s3 + $0x540] sm:$0xf] }
 0x177   : > { %v1038_v31 = vadd.f32 %v2731_v28, %v3445_v42  ;;  %v1032_v32 = vpop.f32.mrb[73].mxu0  ;;  %2962 = vmatprep.subr.bf16.mxu1 %v3185_v55  ;;  %1669 = vmatprep.mubr.f32.mxu0 %v1393_v25 }
 0x178   : > { %v2963_v34 = vpack.c.bf16 %v1232_v26, %v1231_v27  ;;  %v1033_v35 = vadd.f32 %v3445_v42, %v1032_v32  ;;  %v1374_v26 = vld [vmem:[%s4301_s3 + $0x398] sm:$0xff]  ;;  %v1373_v32 = vld [vmem:[%s4301_s3 + $0x390] sm:$0xff] }
 0x179   : > { %v1234_v37 = vmax.f32 %v1038_v31, 0.0  ;;  %1815 = vmatmul.mubr.f32.gmra.mrb[6].mxu1 %v1331_v29  ;;  %1670 = vmatmul.mubr.f32.gmra.mrb[136].mxu0 %v1392_v30  ;;  %v1262_v29 = vld [vmem:[%s4301_s3 + $0x18] sm:$0xff] }
 0x17a   : > { %v1233_v38 = vmax.f32 %v1033_v35, 0.0  ;;  %2964 = vmatpush1.bf16.msra.mxu1 %v2963_v34  ;;  %v2734_v39 = vpop.f32.mrb[74].mxu0  ;;  %1819 = vmatprep.mubr.f32.mxu1 %v1339_v33  ;;  %v1261_v34 = vld [vmem:[%s4301_s3 + $0x10] sm:$0xff] }
 0x17b   : > { %v1048_v43 = vadd.f32 %v2734_v39, %v3445_v42  ;;  %v1042_v44 = vpop.f32.mrb[75].mxu0  ;;  %2965 = vmatprep.subr.bf16.mxu1 %v3185_v55  ;;  %1674 = vmatprep.mubr.f32.mxu0 %v1400_v36 }
 0x17c   : > { %v2966_v46 = vpack.c.bf16 %v1234_v37, %v1233_v38  ;;  %v1043_v47 = vadd.f32 %v3445_v42, %v1042_v44  ;;  %v1381_v37 = vld [vmem:[%s4301_s3 + $0x3d0] sm:$0xff]  ;;  %v1380_v44 = vld [vmem:[%s4301_s3 + $0x3c8] sm:$0xff] }
 0x17d   : > { %v1236_v49 = vmax.f32 %v1048_v43, 0.0  ;;  %1820 = vmatmul.mubr.f32.gmra.mrb[8].mxu1 %v1338_v40  ;;  %1675 = vmatmul.mubr.f32.gmra.mrb[138].mxu0 %v1399_v41  ;;  %v1269_v40 = vld [vmem:[%s4301_s3 + $0x50] sm:$0xff] }
 0x17e   : > { %v1235_v50 = vmax.f32 %v1043_v47, 0.0  ;;  %2967 = vmatpush1.bf16.msra.mxu1 %v2966_v46  ;;  %v2737_v51 = vpop.f32.mrb[76].mxu0  ;;  %1824 = vmatprep.mubr.f32.mxu1 %v1346_v45  ;;  %v1268_v46 = vld [vmem:[%s4301_s3 + $0x48] sm:$0xff] }
 0x17f   : > { %v1058_v54 = vadd.f32 %v2737_v51, %v3445_v42  ;;  %v1052_v56 = vpop.f32.mrb[77].mxu0  ;;  %2968 = vmatprep.subr.bf16.mxu1 %v3185_v55  ;;  %1679 = vmatprep.mubr.f32.mxu0 %v1407_v48 }
 0x180   : > { %v2969_v58 = vpack.c.bf16 %v1236_v49, %v1235_v50  ;;  %v1053_v59 = vadd.f32 %v3445_v42, %v1052_v56  ;;  %v1388_v49 = vld [vmem:[%s4301_s3 + $0x408] sm:$0xff]  ;;  %v1387_v56 = vld [vmem:[%s4301_s3 + $0x400] sm:$0xff] }
 0x181   : > { %v1238_v61 = vmax.f32 %v1058_v54, 0.0  ;;  %1825 = vmatmul.mubr.f32.gmra.mrb[10].mxu1 %v1345_v52  ;;  %1680 = vmatmul.mubr.f32.gmra.mrb[140].mxu0 %v1406_v53  ;;  %v1276_v52 = vld [vmem:[%s4301_s3 + $0x88] sm:$0xff] }
 0x182   : > { %v1237_v62 = vmax.f32 %v1053_v59, 0.0  ;;  %1829 = vmatprep.mubr.f32.mxu1 %v1353_v57  ;;  %2970 = vmatpush1.bf16.msra.mxu1 %v2969_v58  ;;  %v2740_v63 = vpop.f32.mrb[78].mxu0  ;;  %v1275_v58 = vld [vmem:[%s4301_s3 + $0x80] sm:$0xff] }
 0x183   : > { %v1068_v2 = vadd.f32 %v2740_v63, %v3445_v42  ;;  %v1062_v3 = vpop.f32.mrb[79].mxu0  ;;  %2971 = vmatprep.subr.bf16.mxu1 %v3185_v55  ;;  %1684 = vmatprep.mubr.f32.mxu0 %v1414_v60 }
 0x184   : > { %v2972_v5 = vpack.c.bf16 %v1238_v61, %v1237_v62  ;;  %v1063_v6 = vadd.f32 %v3445_v42, %v1062_v3  ;;  %v3772_v42 = vld [vmem:[%s4300_s2] ss:$0 sm:$0xff]  ;;  %v1394_v3 = vld [vmem:[%s4301_s3 + $0x438] sm:$0xff] }
 0x185   : > { %v1240_v8 = vmax.f32 %v1068_v2, 0.0  ;;  %1830 = vmatmul.mubr.f32.gmra.mrb[12].mxu1 %v1352_v0  ;;  %1685 = vmatmul.mubr.f32.gmra.mrb[142].mxu0 %v1413_v1  ;;  %v1395_v61 = vld [vmem:[%s4301_s3 + $0x440] sm:$0xff] }
 0x186   : > { %v1239_v9 = vmax.f32 %v1063_v6, 0.0  ;;  %1834 = vmatprep.mubr.f32.mxu1 %v1360_v4  ;;  %2973 = vmatpush1.bf16.msra.mxu1 %v2972_v5  ;;  %v2743_v10 = vpop.f32.mrb[80].mxu0  ;;  %v1283_v0 = vld [vmem:[%s4301_s3 + $0xc0] sm:$0xff]  ;;  %v1282_v5 = vld [vmem:[%s4301_s3 + $0xb8] sm:$0xff] }
 0x187   : > { %v1078_v13 = vadd.f32 %v3772_v42, %v2743_v10  ;;  %v1072_v14 = vpop.f32.mrb[81].mxu0  ;;  %2974 = vmatprep.subr.bf16.mxu1 %v3185_v55  ;;  %1689 = vmatprep.mubr.f32.mxu0 %v1421_v7  ;;  %v1402_v7 = vld [vmem:[%s4301_s3 + $0x478] sm:$0xff] }
 0x188   : > { %v2975_v16 = vpack.c.bf16 %v1240_v8, %v1239_v9  ;;  %v1073_v17 = vadd.f32 %v3772_v42, %v1072_v14  ;;  %v1401_v14 = vld [vmem:[%s4301_s3 + $0x470] sm:$0xff] }
 0x189   : > { %v1242_v19 = vmax.f32 %v1078_v13, 0.0  ;;  %1835 = vmatmul.mubr.f32.gmra.mrb[14].mxu1 %v1359_v11  ;;  %1690 = vmatmul.mubr.f32.gmra.mrb[144].mxu0 %v1420_v12  ;;  %v1290_v11 = vld [vmem:[%s4301_s3 + $0xf8] sm:$0xff] }
 0x18a   : > { %v1241_v20 = vmax.f32 %v1073_v17, 0.0  ;;  %1839 = vmatprep.mubr.f32.mxu1 %v1367_v15  ;;  %2976 = vmatpush1.bf16.msra.mxu1 %v2975_v16  ;;  %v2746_v22 = vpop.f32.mrb[82].mxu0  ;;  %v1289_v16 = vld [vmem:[%s4301_s3 + $0xf0] sm:$0xff] }
 0x18b   : > { %v1088_v24 = vadd.f32 %v3772_v42, %v2746_v22  ;;  %v1082_v25 = vpop.f32.mrb[83].mxu0  ;;  %2977 = vmatprep.subr.bf16.mxu1 %v3185_v55  ;;  %1694 = vmatprep.mubr.f32.mxu0 %v1428_v18  ;;  %v1409_v18 = vld [vmem:[%s4301_s3 + $0x4b0] sm:$0xff] }
 0x18c   : > { %v2978_v27 = vpack.c.bf16 %v1242_v19, %v1241_v20  ;;  %v1083_v28 = vadd.f32 %v3772_v42, %v1082_v25  ;;  %v1297_v22 = vld [vmem:[%s4301_s3 + $0x130] sm:$0xff]  ;;  %v1408_v25 = vld [vmem:[%s4301_s3 + $0x4a8] sm:$0xff] }
 0x18d   : > { %1840 = vmatmul.mubr.f32.gmra.mrb[16].mxu1 %v1366_v21  ;;  %v1244_v30 = vmax.f32 %v1088_v24, 0.0  ;;  %1695 = vmatmul.mubr.f32.gmra.mrb[146].mxu0 %v1427_v23 }
 0x18e   : > { %v1243_v31 = vmax.f32 %v1083_v28, 0.0  ;;  %1844 = vmatprep.mubr.f32.mxu1 %v1374_v26  ;;  %2979 = vmatpush1.bf16.msra.mxu1 %v2978_v27  ;;  %v2749_v33 = vpop.f32.mrb[84].mxu0  ;;  %v1296_v27 = vld [vmem:[%s4301_s3 + $0x128] sm:$0xff] }
 0x18f   : > { %v1098_v35 = vadd.f32 %v3772_v42, %v2749_v33  ;;  %v1092_v36 = vpop.f32.mrb[85].mxu0  ;;  %2980 = vmatprep.subr.bf16.mxu1 %v3185_v55  ;;  %1764 = vmatprep.mubr.f32.mxu0 %v1262_v29  ;;  %v1416_v28 = vld [vmem:[%s4301_s3 + $0x4e8] sm:$0xff] }
 0x190   : > { %v2981_v38 = vpack.c.bf16 %v1244_v30, %v1243_v31  ;;  %v1093_v39 = vadd.f32 %v3772_v42, %v1092_v36  ;;  %v1304_v33 = vld [vmem:[%s4301_s3 + $0x168] sm:$0xff] }
 0x191   : > { %1845 = vmatmul.mubr.f32.gmra.mrb[18].mxu1 %v1373_v32  ;;  %v1246_v41 = vmax.f32 %v1098_v35, 0.0  ;;  %1765 = vmatmul.mubr.f32.vlgmr.msra.gmra.mrb[98].mxu0 %v1261_v34  ;;  %v1415_v35 = vld [vmem:[%s4301_s3 + $0x4e0] sm:$0xff] }
 0x192   : > { %v1245_v43 = vmax.f32 %v1093_v39, 0.0  ;;  %1849 = vmatprep.mubr.f32.mxu1 %v1381_v37  ;;  %2982 = vmatpush1.bf16.msra.mxu1 %v2981_v38  ;;  %v2752_v45 = vpop.f32.mrb[86].mxu0  ;;  %v1303_v38 = vld [vmem:[%s4301_s3 + $0x160] sm:$0xff] }
 0x193   : > { %v1108_v47 = vadd.f32 %v3772_v42, %v2752_v45  ;;  %v1102_v48 = vpop.f32.mrb[87].mxu0  ;;  %2983 = vmatprep.subr.bf16.mxu1 %v3185_v55  ;;  %1769 = vmatprep.mubr.f32.mxu0 %v1269_v40  ;;  %v1423_v39 = vld [vmem:[%s4301_s3 + $0x520] sm:$0xff] }
 0x194   : > { %v2984_v50 = vpack.c.bf16 %v1246_v41, %v1245_v43  ;;  %v1103_v51 = vadd.f32 %v3772_v42, %v1102_v48  ;;  %v1430_v48 = vld [vmem:[%s4301_s3 + $0x558] sm:$0xf] }
 0x195   : > { %1850 = vmatmul.mubr.f32.gmra.mrb[20].mxu1 %v1380_v44  ;;  %v1248_v53 = vmax.f32 %v1108_v47, 0.0  ;;  %1770 = vmatmul.mubr.f32.gmra.mrb[100].mxu0 %v1268_v46  ;;  %v1422_v46 = vld [vmem:[%s4301_s3 + $0x518] sm:$0xff] }
 0x196   : > { %v1247_v54 = vmax.f32 %v1103_v51, 0.0  ;;  %1854 = vmatprep.mubr.f32.mxu1 %v1388_v49  ;;  %2985 = vmatpush1.bf16.msra.mxu1 %v2984_v50  ;;  %v2755_v57 = vpop.f32.mrb[88].mxu0  ;;  %v1264_v50 = vld [vmem:[%s4301_s3 + $0x28] sm:$0xff]  ;;  %v1263_v51 = vld [vmem:[%s4301_s3 + $0x20] sm:$0xff] }
 0x197   : > { %v1118_v59 = vadd.f32 %v3772_v42, %v2755_v57  ;;  %v1112_v60 = vpop.f32.mrb[89].mxu0  ;;  %2986 = vmatprep.subr.bf16.mxu1 %v3185_v55  ;;  %1774 = vmatprep.mubr.f32.mxu0 %v1276_v52  ;;  %v1270_v52 = vld [vmem:[%s4301_s3 + $0x58] sm:$0xff]  ;;  %v1284_v57 = vld [vmem:[%s4301_s3 + $0xc8] sm:$0xff] }
 0x198   : > { %v2987_v62 = vpack.c.bf16 %v1248_v53, %v1247_v54  ;;  %v1113_v63 = vadd.f32 %v3772_v42, %v1112_v60  ;;  %v1278_v53 = vld [vmem:[%s4301_s3 + $0x98] sm:$0xff]  ;;  %v1277_v54 = vld [vmem:[%s4301_s3 + $0x90] sm:$0xff]  ;;  %v1299_v60 = vld [vmem:[%s4301_s3 + $0x140] sm:$0xff] }
 0x199   : > { %1855 = vmatmul.mubr.f32.gmra.mrb[22].mxu1 %v1387_v56  ;;  %v1250_v1 = vmax.f32 %v1118_v59, 0.0  ;;  %1775 = vmatmul.mubr.f32.gmra.mrb[102].mxu0 %v1275_v58  ;;  %v1285_v56 = vld [vmem:[%s4301_s3 + $0xd0] sm:$0xff]  ;;  %v1292_v58 = vld [vmem:[%s4301_s3 + $0x108] sm:$0xff]  ;;  %v1291_v59 = vld [vmem:[%s4301_s3 + $0x100] sm:$0xff] }
 0x19a   : > { %v1249_v2 = vmax.f32 %v1113_v63, 0.0  ;;  %1859 = vmatprep.mubr.f32.mxu1 %v1395_v61  ;;  %2988 = vmatpush1.bf16.msra.mxu1 %v2987_v62  ;;  %v2758_v4 = vpop.f32.mrb[90].mxu0  ;;  %v1298_v61 = vld [vmem:[%s4301_s3 + $0x138] sm:$0xff]  ;;  %v1305_v63 = vld [vmem:[%s4301_s3 + $0x170] sm:$0xff] }
 0x19b   : > { %v1128_v6 = vadd.f32 %v3772_v42, %v2758_v4  ;;  %v1122_v8 = vpop.f32.mrb[91].mxu0  ;;  %2989 = vmatprep.subr.bf16.mxu1 %v3185_v55  ;;  %1779 = vmatprep.mubr.f32.mxu0 %v1283_v0  ;;  %v1306_v62 = vld [vmem:[%s4301_s3 + $0x178] sm:$0xff]  ;;  %v1313_v0 = vld [vmem:[%s4301_s3 + $0x1b0] sm:$0xff]  ;;  %v1327_v4 = vld [vmem:[%s4301_s3 + $0x220] sm:$0xff] }
 0x19c   : > { %v2990_v9 = vpack.c.bf16 %v1250_v1, %v1249_v2  ;;  %v1123_v10 = vadd.f32 %v3772_v42, %v1122_v8  ;;  %v1312_v1 = vld [vmem:[%s4301_s3 + $0x1a8] sm:$0xff]  ;;  %v1341_v8 = vld [vmem:[%s4301_s3 + $0x290] sm:$0xff] }
 0x19d   : > { %1860 = vmatmul.mubr.f32.gmra.mrb[24].mxu1 %v1394_v3  ;;  %v1252_v12 = vmax.f32 %v1128_v6, 0.0  ;;  %1780 = vmatmul.mubr.f32.gmra.mrb[104].mxu0 %v1282_v5  ;;  %v1320_v2 = vld [vmem:[%s4301_s3 + $0x1e8] sm:$0xff]  ;;  %v1319_v3 = vld [vmem:[%s4301_s3 + $0x1e0] sm:$0xff]  ;;  %v1326_v5 = vld [vmem:[%s4301_s3 + $0x218] sm:$0xff] }
 0x19e   : > { %1864 = vmatprep.mubr.f32.mxu1 %v1402_v7  ;;  %v1251_v13 = vmax.f32 %v1123_v10, 0.0  ;;  %2991 = vmatpush1.bf16.msra.mxu1 %v2990_v9  ;;  %v2761_v15 = vpop.f32.mrb[92].mxu0  ;;  %v1334_v6 = vld [vmem:[%s4301_s3 + $0x258] sm:$0xff]  ;;  %v1333_v7 = vld [vmem:[%s4301_s3 + $0x250] sm:$0xff]  ;;  %v1340_v9 = vld [vmem:[%s4301_s3 + $0x288] sm:$0xff] }
 0x19f   : > { %v1138_v17 = vadd.f32 %v3772_v42, %v2761_v15  ;;  %v1132_v19 = vpop.f32.mrb[93].mxu0  ;;  %2992 = vmatprep.subr.bf16.mxu1 %v3185_v55  ;;  %1784 = vmatprep.mubr.f32.mxu0 %v1290_v11  ;;  %v1348_v10 = vld [vmem:[%s4301_s3 + $0x2c8] sm:$0xff]  ;;  %v1347_v11 = vld [vmem:[%s4301_s3 + $0x2c0] sm:$0xff]  ;;  %v1361_v15 = vld [vmem:[%s4301_s3 + $0x330] sm:$0xff] }
 0x1a0   : > { %v2993_v20 = vpack.c.bf16 %v1252_v12, %v1251_v13  ;;  %v1133_v21 = vadd.f32 %v3772_v42, %v1132_v19  ;;  %v1355_v12 = vld [vmem:[%s4301_s3 + $0x300] sm:$0xff]  ;;  %v1354_v13 = vld [vmem:[%s4301_s3 + $0x2f8] sm:$0xff] }
 0x1a1   : > { %1865 = vmatmul.mubr.f32.gmra.mrb[26].mxu1 %v1401_v14  ;;  %v1254_v23 = vmax.f32 %v1138_v17, 0.0  ;;  %1785 = vmatmul.mubr.f32.gmra.mrb[106].mxu0 %v1289_v16  ;;  %v1362_v14 = vld [vmem:[%s4301_s3 + $0x338] sm:$0xff]  ;;  %v1369_v16 = vld [vmem:[%s4301_s3 + $0x370] sm:$0xff]  ;;  %v1368_v17 = vld [vmem:[%s4301_s3 + $0x368] sm:$0xff] }
 0x1a2   : > { %1869 = vmatprep.mubr.f32.mxu1 %v1409_v18  ;;  %v1253_v24 = vmax.f32 %v1133_v21, 0.0  ;;  %2994 = vmatpush1.bf16.msra.mxu1 %v2993_v20  ;;  %v2764_v26 = vpop.f32.mrb[94].mxu0  ;;  %v1376_v18 = vld [vmem:[%s4301_s3 + $0x3a8] sm:$0xff]  ;;  %v1375_v19 = vld [vmem:[%s4301_s3 + $0x3a0] sm:$0xff]  ;;  %v1382_v21 = vld [vmem:[%s4301_s3 + $0x3d8] sm:$0xff] }
 0x1a3   : > { %v1148_v29 = vadd.f32 %v3772_v42, %v2764_v26  ;;  %v1142_v30 = vpop.f32.mrb[95].mxu0  ;;  %2995 = vmatprep.subr.bf16.mxu1 %v3185_v55  ;;  %1789 = vmatprep.mubr.f32.mxu0 %v1297_v22  ;;  %v1383_v20 = vld [vmem:[%s4301_s3 + $0x3e0] sm:$0xff]  ;;  %v1390_v22 = vld [vmem:[%s4301_s3 + $0x418] sm:$0xff]  ;;  %v1404_v26 = vld [vmem:[%s4301_s3 + $0x488] sm:$0xff] }
 0x1a4   : > { %v2996_v31 = vpack.c.bf16 %v1254_v23, %v1253_v24  ;;  %v1143_v32 = vadd.f32 %v3772_v42, %v1142_v30  ;;  %v1389_v23 = vld [vmem:[%s4301_s3 + $0x410] sm:$0xff]  ;;  %v1418_v30 = vld [vmem:[%s4301_s3 + $0x4f8] sm:$0xff] }
 0x1a5   : > { %1870 = vmatmul.mubr.f32.gmra.mrb[28].mxu1 %v1408_v25  ;;  %v1256_v34 = vmax.f32 %v1148_v29, 0.0  ;;  %1790 = vmatmul.mubr.f32.gmra.mrb[108].mxu0 %v1296_v27  ;;  %v1397_v24 = vld [vmem:[%s4301_s3 + $0x450] sm:$0xff]  ;;  %v1396_v25 = vld [vmem:[%s4301_s3 + $0x448] sm:$0xff]  ;;  %v1403_v27 = vld [vmem:[%s4301_s3 + $0x480] sm:$0xff] }
 0x1a6   : > { %1874 = vmatprep.mubr.f32.mxu1 %v1416_v28  ;;  %v1255_v36 = vmax.f32 %v1143_v32, 0.0  ;;  %2997 = vmatpush1.bf16.msra.mxu1 %v2996_v31  ;;  %v2767_v37 = vpop.f32.mrb[96].mxu0  ;;  %v1411_v28 = vld [vmem:[%s4301_s3 + $0x4c0] sm:$0xff]  ;;  %v1410_v29 = vld [vmem:[%s4301_s3 + $0x4b8] sm:$0xff]  ;;  %v1417_v31 = vld [vmem:[%s4301_s3 + $0x4f0] sm:$0xff] }
 0x1a7   : > { %v1158_v40 = vadd.f32 %v3772_v42, %v2767_v37  ;;  %v1152_v41 = vpop.f32.mrb[97].mxu0  ;;  %2998 = vmatprep.subr.bf16.mxu1 %v3185_v55  ;;  %1794 = vmatprep.mubr.f32.mxu0 %v1304_v33  ;;  %v1425_v32 = vld [vmem:[%s4301_s3 + $0x530] sm:$0xff]  ;;  %v1424_v33 = vld [vmem:[%s4301_s3 + $0x528] sm:$0xff] }
 0x1a8   : > { %v2999_v43 = vpack.c.bf16 %v1256_v34, %v1255_v36  ;;  %v1153_v44 = vadd.f32 %v3772_v42, %v1152_v41  ;;  %v1429_v42 = vld [vmem:[%s4301_s3 + $0x550] sm:$0xf]  ;;  %v1432_v34 = vld [vmem:[%s4301_s3 + $0x568] sm:$0xf]  ;;  %v3187_v36 = vmov 0.0   ;;  %v1279_v41 = vld [vmem:[%s4301_s3 + $0xa0] sm:$0xff] }
 0x1a9   : > { %1875 = vmatmul.mubr.f32.gmra.mrb[30].mxu1 %v1415_v35  ;;  %v1258_v45 = vmax.f32 %v1158_v40, 0.0  ;;  %1795 = vmatmul.mubr.f32.gmra.mrb[110].mxu0 %v1303_v38  ;;  %v1431_v35 = vld [vmem:[%s4301_s3 + $0x560] sm:$0xf]  ;;  %v1265_v37 = vld [vmem:[%s4301_s3 + $0x30] sm:$0xff]  ;;  %v1272_v38 = vld [vmem:[%s4301_s3 + $0x68] sm:$0xff] }
 0x1aa   : > { %1879 = vmatprep.mubr.f32.mxu1 %v1423_v39  ;;  %v1257_v47 = vmax.f32 %v1153_v44, 0.0  ;;  %3000 = vmatpush1.bf16.msra.mxu1 %v2999_v43 }
 0x1ab   : > { %3001 = vmatprep.subr.bf16.mxu1 %v3185_v55  ;;  %v1271_v55 = vld [vmem:[%s4301_s3 + $0x60] sm:$0xff] }
 0x1ac   : > { %v3002_v49 = vpack.c.bf16 %v1258_v45, %v1257_v47  ;;  %v1286_v45 = vld [vmem:[%s4301_s3 + $0xd8] sm:$0xff] }
 0x1ad   : > { %1880 = vmatmul.mubr.f32.gmra.mrb[32].mxu1 %v1422_v46 }
 0x1ae   : > { %1884 = vmatprep.mubr.f32.mxu1 %v1430_v48  ;;  %v1293_v48 = vld [vmem:[%s4301_s3 + $0x110] sm:$0xff] }
 0x1b1   : > { %1885 = vmatmul.mubr.f32.gmra.mrb[34].mxu1 %v1429_v42 }
 0x1b2   : > { %1954 = vmatprep.mubr.f32.mxu1 %v1264_v50  ;;  %v1300_v50 = vld [vmem:[%s4301_s3 + $0x148] sm:$0xff] }
 0x1b5   : > { %1955 = vmatmul.mubr.f32.vlgmr.msra.gmra.mrb[36].mxu1 %v1263_v51 }
 0x1b6   : > { %3003 = vmatpush3.bf16.msra.mxu1 %v3002_v49  ;;  %1959 = vmatprep.mubr.f32.mxu1 %v1271_v55 }
 0x1b9   : > { %1960 = vmatmul.mubr.f32.gmra.mrb[38].mxu1 %v1270_v52  ;;  %v1307_v52 = vld [vmem:[%s4301_s3 + $0x180] sm:$0xff] }
 0x1ba   : > { %1964 = vmatprep.mubr.f32.mxu1 %v1278_v53 }
 0x1bd   : > { %1965 = vmatmul.mubr.f32.gmra.mrb[40].mxu1 %v1277_v54 }
 0x1be   : > { %1969 = vmatprep.mubr.f32.mxu1 %v1285_v56  ;;  %v1314_v56 = vld [vmem:[%s4301_s3 + $0x1b8] sm:$0xff] }
 0x1c1   : > { %1970 = vmatmul.mubr.f32.gmra.mrb[42].mxu1 %v1284_v57 }
 0x1c2   : > { %1974 = vmatprep.mubr.f32.mxu1 %v1292_v58 }
 0x1c5   : > { %1975 = vmatmul.mubr.f32.gmra.mrb[44].mxu1 %v1291_v59  ;;  %v1321_v59 = vld [vmem:[%s4301_s3 + $0x1f0] sm:$0xff] }
 0x1c6   : > { %1979 = vmatprep.mubr.f32.mxu1 %v1299_v60 }
 0x1c9   : > { %1980 = vmatmul.mubr.f32.gmra.mrb[46].mxu1 %v1298_v61 }
 0x1ca   : > { %1984 = vmatprep.mubr.f32.mxu1 %v1306_v62  ;;  %v1328_v62 = vld [vmem:[%s4301_s3 + $0x228] sm:$0xff] }
 0x1cd   : > { %1985 = vmatmul.mubr.f32.gmra.mrb[48].mxu1 %v1305_v63 }
 0x1ce   : > { %1989 = vmatprep.mubr.f32.mxu1 %v1313_v0 }
 0x1d1   : > { %1990 = vmatmul.mubr.f32.gmra.mrb[0].mxu1 %v1312_v1  ;;  %v1335_v1 = vld [vmem:[%s4301_s3 + $0x260] sm:$0xff] }
 0x1d2   : > { %1994 = vmatprep.mubr.f32.mxu1 %v1320_v2 }
 0x1d5   : > { %1995 = vmatmul.mubr.f32.gmra.mrb[2].mxu1 %v1319_v3 }
 0x1d6   : > { %1999 = vmatprep.mubr.f32.mxu1 %v1327_v4  ;;  %v1342_v4 = vld [vmem:[%s4301_s3 + $0x298] sm:$0xff] }
 0x1d9   : > { %2000 = vmatmul.mubr.f32.gmra.mrb[4].mxu1 %v1326_v5 }
 0x1da   : > { %2004 = vmatprep.mubr.f32.mxu1 %v1334_v6 }
 0x1dd   : > { %2005 = vmatmul.mubr.f32.gmra.mrb[6].mxu1 %v1333_v7  ;;  %v1349_v7 = vld [vmem:[%s4301_s3 + $0x2d0] sm:$0xff] }
 0x1de   : > { %2009 = vmatprep.mubr.f32.mxu1 %v1341_v8 }
 0x1e1   : > { %2010 = vmatmul.mubr.f32.gmra.mrb[8].mxu1 %v1340_v9 }
 0x1e2   : > { %2014 = vmatprep.mubr.f32.mxu1 %v1348_v10  ;;  %v1356_v10 = vld [vmem:[%s4301_s3 + $0x308] sm:$0xff] }
 0x1e5   : > { %2015 = vmatmul.mubr.f32.gmra.mrb[10].mxu1 %v1347_v11 }
 0x1e6   : > { %2019 = vmatprep.mubr.f32.mxu1 %v1355_v12 }
 0x1e9   : > { %2020 = vmatmul.mubr.f32.gmra.mrb[12].mxu1 %v1354_v13  ;;  %v1363_v13 = vld [vmem:[%s4301_s3 + $0x340] sm:$0xff] }
 0x1ea   : > { %2024 = vmatprep.mubr.f32.mxu1 %v1362_v14 }
 0x1ed   : > { %2025 = vmatmul.mubr.f32.gmra.mrb[14].mxu1 %v1361_v15 }
 0x1ee   : > { %2029 = vmatprep.mubr.f32.mxu1 %v1369_v16  ;;  %v1370_v16 = vld [vmem:[%s4301_s3 + $0x378] sm:$0xff] }
 0x1f1   : > { %2030 = vmatmul.mubr.f32.gmra.mrb[16].mxu1 %v1368_v17 }
 0x1f2   : > { %2034 = vmatprep.mubr.f32.mxu1 %v1376_v18 }
 0x1f5   : > { %2035 = vmatmul.mubr.f32.gmra.mrb[18].mxu1 %v1375_v19  ;;  %v1377_v19 = vld [vmem:[%s4301_s3 + $0x3b0] sm:$0xff] }
 0x1f6   : > { %2039 = vmatprep.mubr.f32.mxu1 %v1383_v20 }
 0x1f9   : > { %2040 = vmatmul.mubr.f32.gmra.mrb[20].mxu1 %v1382_v21 }
 0x1fa   : > { %2044 = vmatprep.mubr.f32.mxu1 %v1390_v22  ;;  %v1384_v22 = vld [vmem:[%s4301_s3 + $0x3e8] sm:$0xff] }
 0x1fd   : > { %2045 = vmatmul.mubr.f32.gmra.mrb[22].mxu1 %v1389_v23 }
 0x1fe   : > { %2049 = vmatprep.mubr.f32.mxu1 %v1397_v24 }
 0x201   : > { %2050 = vmatmul.mubr.f32.gmra.mrb[24].mxu1 %v1396_v25  ;;  %v1391_v25 = vld [vmem:[%s4301_s3 + $0x420] sm:$0xff] }
 0x202   : > { %2054 = vmatprep.mubr.f32.mxu1 %v1404_v26 }
 0x205   : > { %2055 = vmatmul.mubr.f32.gmra.mrb[26].mxu1 %v1403_v27 }
 0x206   : > { %2059 = vmatprep.mubr.f32.mxu1 %v1411_v28  ;;  %v1398_v28 = vld [vmem:[%s4301_s3 + $0x458] sm:$0xff] }
 0x209   : > { %2060 = vmatmul.mubr.f32.gmra.mrb[28].mxu1 %v1410_v29 }
 0x20a   : > { %2064 = vmatprep.mubr.f32.mxu1 %v1418_v30 }
 0x20d   : > { %2065 = vmatmul.mubr.f32.gmra.mrb[30].mxu1 %v1417_v31  ;;  %v1405_v31 = vld [vmem:[%s4301_s3 + $0x490] sm:$0xff] }
 0x20e   : > { %2069 = vmatprep.mubr.f32.mxu1 %v1425_v32 }
 0x211   : > { %2070 = vmatmul.mubr.f32.gmra.mrb[32].mxu1 %v1424_v33 }
 0x212   : > { %2074 = vmatprep.mubr.f32.mxu1 %v1432_v34  ;;  %v1412_v34 = vld [vmem:[%s4301_s3 + $0x4c8] sm:$0xff] }
 0x215   : > { %2075 = vmatmul.mubr.f32.gmra.mrb[34].mxu1 %v1431_v35 }
 0x216   : > { %2772 = vmatprep.mubr.msk.f32.mxu1 %vm3186_vm4, %v3187_v36 }
 0x219   : > { %2773 = vmatmul.mubr.msk.f32.vlgmr.msra.gmra.mrb[36].mxu1 %vm1434_vm5, %v1265_v37 }
 0x21a   : > { %2775 = vmatprep.mubr.msk.f32.mxu1 %vm3186_vm4, %v3187_v36 }
 0x21c   : > { %v4071_v39 = vpop.f32.mrb[112].mxu0 }
 0x21d   : > { %2776 = vmatmul.mubr.msk.f32.gmra.mrb[38].mxu1 %vm1434_vm5, %v1272_v38  ;;  %v1613_v40 = vpop.f32.mrb[113].mxu0  ;;  %v1419_v38 = vld [vmem:[%s4301_s3 + $0x500] sm:$0xff] }
 0x21e   : > { %2778 = vmatprep.mubr.msk.f32.mxu1 %vm3186_vm4, %v3187_v36 }
 0x220   : > { %v4079_v43 = vpop.f32.mrb[114].mxu0 }
 0x221   : > { %2779 = vmatmul.mubr.msk.f32.gmra.mrb[40].mxu1 %vm1434_vm5, %v1279_v41  ;;  %v1618_v44 = vpop.f32.mrb[115].mxu0 }
 0x222   : > { %2781 = vmatprep.mubr.msk.f32.mxu1 %vm3186_vm4, %v3187_v36  ;;  %v1426_v44 = vld [vmem:[%s4301_s3 + $0x538] sm:$0xff] }
 0x224   : > { %v4087_v46 = vpop.f32.mrb[116].mxu0 }
 0x225   : > { %2782 = vmatmul.mubr.msk.f32.gmra.mrb[42].mxu1 %vm1434_vm5, %v1286_v45  ;;  %v1623_v47 = vpop.f32.mrb[117].mxu0 }
 0x226   : > { %2784 = vmatprep.mubr.msk.f32.mxu1 %vm3186_vm4, %v3187_v36 }
 0x228   : > { %v4095_v49 = vpop.f32.mrb[118].mxu0 }
 0x229   : > { %2785 = vmatmul.mubr.msk.f32.gmra.mrb[44].mxu1 %vm1434_vm5, %v1293_v48  ;;  %v1628_v42 = vpop.f32.mrb[119].mxu0  ;;  %v1433_v48 = vld [vmem:[%s4301_s3 + $0x570] sm:$0xf] }
 0x22a   : > { %2787 = vmatprep.mubr.msk.f32.mxu1 %vm3186_vm4, %v3187_v36 }
 0x22c   : > { %v4103_v51 = vpop.f32.mrb[120].mxu0 }
 0x22d   : > { %2788 = vmatmul.mubr.msk.f32.gmra.mrb[46].mxu1 %vm1434_vm5, %v1300_v50  ;;  %v1633_v55 = vpop.f32.mrb[121].mxu0 }
 0x22e   : > { %2790 = vmatprep.mubr.msk.f32.mxu1 %vm3186_vm4, %v3187_v36 }
 0x230   : > { %v4111_v53 = vpop.f32.mrb[122].mxu0 }
 0x231   : > { %2791 = vmatmul.mubr.msk.f32.gmra.mrb[48].mxu1 %vm1434_vm5, %v1307_v52  ;;  %v1638_v54 = vpop.f32.mrb[123].mxu0 }
 0x232   : > { %2793 = vmatprep.mubr.msk.f32.mxu1 %vm3186_vm4, %v3187_v36 }
 0x234   : > { %v4119_v57 = vpop.f32.mrb[124].mxu0 }
 0x235   : > { %2794 = vmatmul.mubr.msk.f32.gmra.mrb[0].mxu1 %vm1434_vm5, %v1314_v56  ;;  %v1643_v58 = vpop.f32.mrb[125].mxu0 }
 0x236   : > { %2796 = vmatprep.mubr.msk.f32.mxu1 %vm3186_vm4, %v3187_v36 }
 0x238   : > { %v4127_v60 = vpop.f32.mrb[126].mxu0 }
 0x239   : > { %2797 = vmatmul.mubr.msk.f32.gmra.mrb[2].mxu1 %vm1434_vm5, %v1321_v59  ;;  %v1648_v61 = vpop.f32.mrb[127].mxu0 }
 0x23a   : > { %2799 = vmatprep.mubr.msk.f32.mxu1 %vm3186_vm4, %v3187_v36 }
 0x23c   : > { %v4135_v63 = vpop.f32.mrb[128].mxu0 }
 0x23d   : > { %2800 = vmatmul.mubr.msk.f32.gmra.mrb[4].mxu1 %vm1434_vm5, %v1328_v62  ;;  %v1653_v0 = vpop.f32.mrb[129].mxu0 }
 0x23e   : > { %2802 = vmatprep.mubr.msk.f32.mxu1 %vm3186_vm4, %v3187_v36 }
 0x240   : > { %v4143_v2 = vpop.f32.mrb[130].mxu0 }
 0x241   : > { %2803 = vmatmul.mubr.msk.f32.gmra.mrb[6].mxu1 %vm1434_vm5, %v1335_v1  ;;  %v1658_v3 = vpop.f32.mrb[131].mxu0 }
 0x242   : > { %2805 = vmatprep.mubr.msk.f32.mxu1 %vm3186_vm4, %v3187_v36 }
 0x244   : > { %v4151_v5 = vpop.f32.mrb[132].mxu0 }
 0x245   : > { %2806 = vmatmul.mubr.msk.f32.gmra.mrb[8].mxu1 %vm1434_vm5, %v1342_v4  ;;  %v1663_v6 = vpop.f32.mrb[133].mxu0 }
 0x246   : > { %2808 = vmatprep.mubr.msk.f32.mxu1 %vm3186_vm4, %v3187_v36 }
 0x248   : > { %v4159_v8 = vpop.f32.mrb[134].mxu0 }
 0x249   : > { %2809 = vmatmul.mubr.msk.f32.gmra.mrb[10].mxu1 %vm1434_vm5, %v1349_v7  ;;  %v1668_v9 = vpop.f32.mrb[135].mxu0 }
 0x24a   : > { %2811 = vmatprep.mubr.msk.f32.mxu1 %vm3186_vm4, %v3187_v36 }
 0x24c   : > { %v4167_v11 = vpop.f32.mrb[136].mxu0 }
 0x24d   : > { %2812 = vmatmul.mubr.msk.f32.gmra.mrb[12].mxu1 %vm1434_vm5, %v1356_v10  ;;  %v1673_v12 = vpop.f32.mrb[137].mxu0 }
 0x24e   : > { %2814 = vmatprep.mubr.msk.f32.mxu1 %vm3186_vm4, %v3187_v36 }
 0x250   : > { %v4175_v14 = vpop.f32.mrb[138].mxu0 }
 0x251   : > { %2815 = vmatmul.mubr.msk.f32.gmra.mrb[14].mxu1 %vm1434_vm5, %v1363_v13  ;;  %v1678_v15 = vpop.f32.mrb[139].mxu0 }
 0x252   : > { %2817 = vmatprep.mubr.msk.f32.mxu1 %vm3186_vm4, %v3187_v36 }
 0x254   : > { %v4183_v17 = vpop.f32.mrb[140].mxu0 }
 0x255   : > { %2818 = vmatmul.mubr.msk.f32.gmra.mrb[16].mxu1 %vm1434_vm5, %v1370_v16  ;;  %v1683_v18 = vpop.f32.mrb[141].mxu0 }
 0x256   : > { %2820 = vmatprep.mubr.msk.f32.mxu1 %vm3186_vm4, %v3187_v36 }
 0x258   : > { %v4191_v20 = vpop.f32.mrb[142].mxu0 }
 0x259   : > { %2821 = vmatmul.mubr.msk.f32.gmra.mrb[18].mxu1 %vm1434_vm5, %v1377_v19  ;;  %v1688_v21 = vpop.f32.mrb[143].mxu0 }
 0x25a   : > { %2823 = vmatprep.mubr.msk.f32.mxu1 %vm3186_vm4, %v3187_v36 }
 0x25c   : > { %v4199_v23 = vpop.f32.mrb[144].mxu0 }
 0x25d   : > { %2824 = vmatmul.mubr.msk.f32.gmra.mrb[20].mxu1 %vm1434_vm5, %v1384_v22  ;;  %v1693_v24 = vpop.f32.mrb[145].mxu0 }
 0x25e   : > { %2826 = vmatprep.mubr.msk.f32.mxu1 %vm3186_vm4, %v3187_v36 }
 0x260   : > { %v4207_v26 = vpop.f32.mrb[146].mxu0 }
 0x261   : > { %2827 = vmatmul.mubr.msk.f32.gmra.mrb[22].mxu1 %vm1434_vm5, %v1391_v25  ;;  %v1698_v27 = vpop.f32.mrb[147].mxu0 }
 0x262   : > { %2829 = vmatprep.mubr.msk.f32.mxu1 %vm3186_vm4, %v3187_v36 }
 0x264   : > { %v1766_v29 = vpop.f32.mrb[98].mxu0 }
 0x265   : > { %2830 = vmatmul.mubr.msk.f32.gmra.mrb[24].mxu1 %vm1434_vm5, %v1398_v28  ;;  %v1768_v30 = vpop.f32.mrb[99].mxu0 }
 0x266   : > { %2832 = vmatprep.mubr.msk.f32.mxu1 %vm3186_vm4, %v3187_v36 }
 0x268   : > { %v1771_v32 = vpop.f32.mrb[100].mxu0 }
 0x269   : > { %2833 = vmatmul.mubr.msk.f32.gmra.mrb[26].mxu1 %vm1434_vm5, %v1405_v31  ;;  %v1773_v33 = vpop.f32.mrb[101].mxu0 }
 0x26a   : > { %2835 = vmatprep.mubr.msk.f32.mxu1 %vm3186_vm4, %v3187_v36 }
 0x26c   : > { %v1776_v35 = vpop.f32.mrb[102].mxu0 }
 0x26d   : > { %2836 = vmatmul.mubr.msk.f32.gmra.mrb[28].mxu1 %vm1434_vm5, %v1412_v34  ;;  %v1778_v37 = vpop.f32.mrb[103].mxu0 }
 0x26e   : > { %2838 = vmatprep.mubr.msk.f32.mxu1 %vm3186_vm4, %v3187_v36 }
 0x270   : > { %v1781_v40 = vpop.f32.mrb[104].mxu0 }
 0x271   : > { %2839 = vmatmul.mubr.msk.f32.gmra.mrb[30].mxu1 %vm1434_vm5, %v1419_v38  ;;  %v1783_v41 = vpop.f32.mrb[105].mxu0 }
 0x272   : > { %2841 = vmatprep.mubr.msk.f32.mxu1 %vm3186_vm4, %v3187_v36 }
 0x274   : > { %v1786_v45 = vpop.f32.mrb[106].mxu0 }
 0x275   : > { %2842 = vmatmul.mubr.msk.f32.gmra.mrb[32].mxu1 %vm1434_vm5, %v1426_v44  ;;  %v1788_v47 = vpop.f32.mrb[107].mxu0 }
 0x276   : > { %2844 = vmatprep.mubr.msk.f32.mxu1 %vm3186_vm4, %v3187_v36 }
 0x278   : > { %v1791_v42 = vpop.f32.mrb[108].mxu0 }
 0x279   : > { %2845 = vmatmul.mubr.msk.f32.gmra.mrb[34].mxu1 %vm1434_vm5, %v1433_v48  ;;  %v1793_v50 = vpop.f32.mrb[109].mxu0 }
 0x27c   : > { %v1796_v55 = vpop.f32.mrb[110].mxu0 }
 0x27d   : > { %v1798_v52 = vpop.f32.mrb[111].mxu0 }
 0x2ec   : > { %v2146_v36 = vpop.f32.mrb[36].mxu1 }
 0x2ed   : > { %v3036_v54 = vadd.f32 %v2146_v36, %v1766_v29  ;;  %v2774_v56 = vpop.f32.mrb[37].mxu1 }
 0x2ef   : > { %2270 = vst [vmem:[%s4250_s26] sm:$0xff] %v3036_v54 }
 0x2f0   : > { %v2151_v58 = vpop.f32.mrb[38].mxu1 }
 0x2f1   : > { %v3037_v59 = vadd.f32 %v2151_v58, %v1771_v32  ;;  %v2777_v61 = vpop.f32.mrb[39].mxu1 }
 0x2f3   : > { %2271 = vst [vmem:[%s4250_s26 + $0x8] sm:$0xff] %v3037_v59 }
 0x2f4   : > { %v2156_v62 = vpop.f32.mrb[40].mxu1 }
 0x2f5   : > { %v3038_v0 = vadd.f32 %v2156_v62, %v1776_v35  ;;  %v2780_v1 = vpop.f32.mrb[41].mxu1 }
 0x2f7   : > { %2272 = vst [vmem:[%s4250_s26 + $0x10] sm:$0xff] %v3038_v0 }
 0x2f8   : > { %v2161_v3 = vpop.f32.mrb[42].mxu1 }
 0x2f9   : > { %v3039_v4 = vadd.f32 %v2161_v3, %v1781_v40  ;;  %v2783_v6 = vpop.f32.mrb[43].mxu1 }
 0x2fb   : > { %2273 = vst [vmem:[%s4250_s26 + $0x18] sm:$0xff] %v3039_v4 }
 0x2fc   : > { %v2166_v7 = vpop.f32.mrb[44].mxu1 }
 0x2fd   : > { %v3040_v9 = vadd.f32 %v2166_v7, %v1786_v45  ;;  %v2786_v10 = vpop.f32.mrb[45].mxu1 }
 0x2ff   : > { %2274 = vst [vmem:[%s4250_s26 + $0x20] sm:$0xff] %v3040_v9 }
 0x300   : > { %v2171_v12 = vpop.f32.mrb[46].mxu1 }
 0x301   : > { %v3041_v13 = vadd.f32 %v2171_v12, %v1791_v42  ;;  %v2789_v15 = vpop.f32.mrb[47].mxu1 }
 0x303   : > { %2275 = vst [vmem:[%s4250_s26 + $0x28] sm:$0xff] %v3041_v13 }
 0x304   : > { %v2176_v16 = vpop.f32.mrb[48].mxu1 }
 0x305   : > { %v3042_v18 = vadd.f32 %v2176_v16, %v1796_v55  ;;  %v2792_v19 = vpop.f32.mrb[49].mxu1 }
 0x307   : > { %2276 = vst [vmem:[%s4250_s26 + $0x30] sm:$0xff] %v3042_v18 }
 0x308   : > { %v2181_v21 = vpop.f32.mrb[0].mxu1 }
 0x309   : > { %v3043_v22 = vadd.f32 %v2181_v21, %v4071_v39  ;;  %v2795_v24 = vpop.f32.mrb[1].mxu1 }
 0x30b   : > { %2277 = vst [vmem:[%s4250_s26 + $0x38] sm:$0xff] %v3043_v22 }
 0x30c   : > { %v2186_v25 = vpop.f32.mrb[2].mxu1 }
 0x30d   : > { %v3044_v27 = vadd.f32 %v2186_v25, %v4079_v43  ;;  %v2798_v28 = vpop.f32.mrb[3].mxu1 }
 0x30f   : > { %2278 = vst [vmem:[%s4250_s26 + $0x40] sm:$0xff] %v3044_v27 }
 0x310   : > { %v2191_v29 = vpop.f32.mrb[4].mxu1 }
 0x311   : > { %v3045_v30 = vadd.f32 %v2191_v29, %v4087_v46  ;;  %v2801_v31 = vpop.f32.mrb[5].mxu1 }
 0x313   : > { %2279 = vst [vmem:[%s4250_s26 + $0x48] sm:$0xff] %v3045_v30 }
 0x314   : > { %v2196_v32 = vpop.f32.mrb[6].mxu1 }
 0x315   : > { %v3046_v33 = vadd.f32 %v2196_v32, %v4095_v49  ;;  %v2804_v34 = vpop.f32.mrb[7].mxu1 }
 0x317   : > { %2280 = vst [vmem:[%s4250_s26 + $0x50] sm:$0xff] %v3046_v33 }
 0x318   : > { %v2201_v39 = vpop.f32.mrb[8].mxu1 }
 0x319   : > { %v3047_v35 = vadd.f32 %v2201_v39, %v4103_v51  ;;  %v2807_v37 = vpop.f32.mrb[9].mxu1 }
 0x31b   : > { %2281 = vst [vmem:[%s4250_s26 + $0x58] sm:$0xff] %v3047_v35 }
 0x31c   : > { %v2206_v43 = vpop.f32.mrb[10].mxu1 }
 0x31d   : > { %v3048_v38 = vadd.f32 %v2206_v43, %v4111_v53  ;;  %v2810_v40 = vpop.f32.mrb[11].mxu1 }
 0x31f   : > { %2282 = vst [vmem:[%s4250_s26 + $0x60] sm:$0xff] %v3048_v38 }
 0x320   : > { %v2211_v46 = vpop.f32.mrb[12].mxu1 }
 0x321   : > { %v3049_v41 = vadd.f32 %v2211_v46, %v4119_v57  ;;  %v2813_v44 = vpop.f32.mrb[13].mxu1 }
 0x323   : > { %2283 = vst [vmem:[%s4250_s26 + $0x68] sm:$0xff] %v3049_v41 }
 0x324   : > { %v2216_v49 = vpop.f32.mrb[14].mxu1 }
 0x325   : > { %v3050_v45 = vadd.f32 %v2216_v49, %v4127_v60  ;;  %v2816_v47 = vpop.f32.mrb[15].mxu1 }
 0x327   : > { %2284 = vst [vmem:[%s4250_s26 + $0x70] sm:$0xff] %v3050_v45 }
 0x328   : > { %v2221_v51 = vpop.f32.mrb[16].mxu1 }
 0x329   : > { %v3051_v48 = vadd.f32 %v2221_v51, %v4135_v63  ;;  %v2819_v42 = vpop.f32.mrb[17].mxu1 }
 0x32b   : > { %2285 = vst [vmem:[%s4250_s26 + $0x78] sm:$0xff] %v3051_v48 }
 0x32c   : > { %v2226_v53 = vpop.f32.mrb[18].mxu1 }
 0x32d   : > { %v3052_v50 = vadd.f32 %v2226_v53, %v4143_v2  ;;  %v2822_v55 = vpop.f32.mrb[19].mxu1 }
 0x32f   : > { %2286 = vst [vmem:[%s4250_s26 + $0x80] sm:$0xff] %v3052_v50 }
 0x330   : > { %v2231_v57 = vpop.f32.mrb[20].mxu1 }
 0x331   : > { %v3053_v52 = vadd.f32 %v2231_v57, %v4151_v5  ;;  %v2825_v36 = vpop.f32.mrb[21].mxu1 }
 0x333   : > { %2287 = vst [vmem:[%s4250_s26 + $0x88] sm:$0xff] %v3053_v52 }
 0x334   : > { %v2236_v60 = vpop.f32.mrb[22].mxu1 }
 0x335   : > { %v3054_v54 = vadd.f32 %v2236_v60, %v4159_v8  ;;  %v2828_v56 = vpop.f32.mrb[23].mxu1 }
 0x337   : > { %2288 = vst [vmem:[%s4250_s26 + $0x90] sm:$0xff] %v3054_v54 }
 0x338   : > { %v2241_v63 = vpop.f32.mrb[24].mxu1 }
 0x339   : > { %v3055_v58 = vadd.f32 %v2241_v63, %v4167_v11  ;;  %v2831_v59 = vpop.f32.mrb[25].mxu1 }
 0x33b   : > { %2289 = vst [vmem:[%s4250_s26 + $0x98] sm:$0xff] %v3055_v58 }
 0x33c   : > { %v2246_v2 = vpop.f32.mrb[26].mxu1 }
 0x33d   : > { %v3056_v61 = vadd.f32 %v2246_v2, %v4175_v14  ;;  %v2834_v62 = vpop.f32.mrb[27].mxu1 }
 0x33f   : > { %2290 = vst [vmem:[%s4250_s26 + $0xa0] sm:$0xff] %v3056_v61 }
 0x340   : > { %v2251_v5 = vpop.f32.mrb[28].mxu1 }
 0x341   : > { %v3057_v0 = vadd.f32 %v2251_v5, %v4183_v17  ;;  %v2837_v1 = vpop.f32.mrb[29].mxu1 }
 0x343   : > { %2291 = vst [vmem:[%s4250_s26 + $0xa8] sm:$0xff] %v3057_v0 }
 0x344   : > { %v2256_v8 = vpop.f32.mrb[30].mxu1 }
 0x345   : > { %v3058_v3 = vadd.f32 %v2256_v8, %v4191_v20  ;;  %v2840_v4 = vpop.f32.mrb[31].mxu1 }
 0x347   : > { %2292 = vst [vmem:[%s4250_s26 + $0xb0] sm:$0xff] %v3058_v3 }
 0x348   : > { %v2261_v11 = vpop.f32.mrb[32].mxu1 }
 0x349   : > { %v3059_v6 = vadd.f32 %v2261_v11, %v4199_v23  ;;  %v2843_v7 = vpop.f32.mrb[33].mxu1 }
 0x34b   : > { %2293 = vst [vmem:[%s4250_s26 + $0xb8] sm:$0xff] %v3059_v6 }
 0x34c   : > { %v2266_v9 = vpop.f32.mrb[34].mxu1 }
 0x34d   : > { %v3060_v14 = vadd.f32 %v2266_v9, %v4207_v26  ;;  %v2846_v10 = vpop.f32.mrb[35].mxu1 }
 0x34f   : > { %2294 = vst [vmem:[%s4250_s26 + $0xc0] sm:$0xf] %v3060_v14 }
 0x350 PF: > { %s14_s15 = sadd.s32 1, %s3182_s15  }
 0x351   : > { %p11_p4 = scmp.ge.s32.totalorder %s14_s15, 4  }
 0x353   :  { %13 = sbr.rel (!%p11_p4) target bundleno = 1 (0x1), region = 66 }

// kernel: lenet_forward.4
= control target key start
LH: loop header
LB: loop body
LE: loop exit
PB: predicated region body
PF: predicated region fallthrough
CT: control target
= control target key end

     0   :  { %s779_s15 = smov 0   ;;  %s932_s0 = inlined_call_operand.vmem [shape: f32[2,100,150], index: 0, kind: input, shape index: {}]   ;;  %s933_s1 = inlined_call_operand.vmem [shape: f32[150,128], index: 1, kind: input, shape index: {}]   ;;  %s934_s2 = inlined_call_operand.vmem [shape: f32[1,128], index: 2, kind: input, shape index: {}]   ;;  %s935_s3 = inlined_call_operand.vmem [shape: f32[25,100], index: 3, kind: input, shape index: {}]   ;;  %s936_s4 = inlined_call_operand.vmem [shape: f32[2,25,128], index: 4, kind: output, shape index: {}]  }
   0x1 LB: > { %s602_s16 = sadd.s32 4294967295, %s750_s15   ;;  %p606_p0 = scmp.ge.s32.totalorder %s750_s15, 1  ;;  %s750_s15 = sphi %s779_s15, %s14_s15  }
   0x2   : > { %p162_p1 = scmp.lt.s32.totalorder %s750_s15, 3 }
   0x4   : > { %p163_p2 = pnand %p606_p0, %p162_p1 }
   0x5   : > { %v224_v0 = vld [vmem:[%s933_s1] sm:$0xff] (!%p163_p2)  ;;  %v225_v1 = vld [vmem:[%s933_s1 + $0x8] sm:$0xff] (!%p163_p2)  ;;  %v226_v2 = vld [vmem:[%s933_s1 + $0x10] sm:$0xff] (!%p163_p2)  ;;  %v752_v3 = vmov (!%p163_p2), 0.0|0.0   ;;  %p188_p3 = scmp.lt.s32.totalorder (!%p163_p2), %s602_s16, 1  ;;  %vm250_vm0 = vcmask (!%p163_p2), 179200  }
   0x6   : > { %166 = sbr.rel (%p163_p2) target bundleno = 531 (0x213), region = 36  ;;  %682 = vmatprep.subr.bf16.mxu0 (!%p163_p2), %v752_v3  ;;  %v683_v4 = vpack.c.bf16 (!%p163_p2), %v225_v1, %v224_v0  ;;  %v227_v5 = vld [vmem:[%s933_s1 + $0x18] sm:$0xff] (!%p163_p2)  ;;  %v228_v7 = vld [vmem:[%s933_s1 + $0x20] sm:$0xff] (!%p163_p2)  ;;  %v229_v8 = vld [vmem:[%s933_s1 + $0x28] sm:$0xff] (!%p163_p2)  ;;  %v753_v29 = vmov (!%p163_p2), 0.0   ;;  %vm290_vm1 = vcmask (!%p163_p2), 1045504  }
   0x7   : > { %v686_v6 = vpack.c.bf16 (!%p163_p2), %v227_v5, %v226_v2  ;;  %v689_v9 = vpack.c.bf16 (!%p163_p2), %v229_v8, %v228_v7  ;;  %v230_v10 = vld [vmem:[%s933_s1 + $0x30] sm:$0xff] (!%p163_p2)  ;;  %v231_v11 = vld [vmem:[%s933_s1 + $0x38] sm:$0xff] (!%p163_p2)  ;;  %v232_v14 = vld [vmem:[%s933_s1 + $0x40] sm:$0xff] (!%p163_p2)  ;;  %vm441_vm2 = vcmask (!%p163_p2), 818176   ;;  %vm454_vm3 = vcmask (!%p163_p2), 1043456  }
   0x8   : > { %684 = vmatpush1.bf16.msra.mxu0 (!%p163_p2), %v683_v4  ;;  %v692_v13 = vpack.c.bf16 (!%p163_p2), %v231_v11, %v230_v10  ;;  %v233_v15 = vld [vmem:[%s933_s1 + $0x48] sm:$0xff] (!%p163_p2)  ;;  %v234_v17 = vld [vmem:[%s933_s1 + $0x50] sm:$0xff] (!%p163_p2)  ;;  %v235_v18 = vld [vmem:[%s933_s1 + $0x58] sm:$0xff] (!%p163_p2) }
   0x9   : > { %685 = vmatprep.subr.bf16.mxu0 (!%p163_p2), %v752_v3  ;;  %v695_v16 = vpack.c.bf16 (!%p163_p2), %v233_v15, %v232_v14  ;;  %v698_v19 = vpack.c.bf16 (!%p163_p2), %v235_v18, %v234_v17  ;;  %v236_v20 = vld [vmem:[%s933_s1 + $0x60] sm:$0xff] (!%p163_p2)  ;;  %v237_v21 = vld [vmem:[%s933_s1 + $0x68] sm:$0xff] (!%p163_p2)  ;;  %v238_v23 = vld [vmem:[%s933_s1 + $0x70] sm:$0xff] (!%p163_p2) }
   0xa   : > { %v701_v22 = vpack.c.bf16 (!%p163_p2), %v237_v21, %v236_v20  ;;  %v239_v24 = vld [vmem:[%s933_s1 + $0x78] sm:$0xff] (!%p163_p2)  ;;  %v240_v26 = vld [vmem:[%s933_s1 + $0x80] sm:$0xff] (!%p163_p2)  ;;  %v241_v27 = vld [vmem:[%s933_s1 + $0x88] sm:$0xff] (!%p163_p2) }
   0xb   : > { %v704_v25 = vpack.c.bf16 (!%p163_p2), %v239_v24, %v238_v23  ;;  %v707_v28 = vpack.c.bf16 (!%p163_p2), %v241_v27, %v240_v26  ;;  %v242_v30 = vld [vmem:[%s933_s1 + $0x90] sm:$0x3f] (!%p163_p2)  ;;  %v437_v56 = vld [vmem:[%s935_s3] sm:$0xff] (!%p163_p2) }
   0xc   : > { %687 = vmatpush1.bf16.msra.mxu0 (!%p163_p2), %v686_v6  ;;  %676 = vmatprep.mubr.msk.f32.mxu1 (!%p163_p2), %vm441_vm2, %v437_v56  ;;  %v898_v57 = vld [vmem:[%s934_s2] ss:$0 sm:$0xff] (!%p163_p2) }
   0xd   : > { %s938_s16 = smov (!%p188_p3, %s602_s16), 1  ;;  %688 = vmatprep.subr.bf16.mxu0 %v752_v3 }
   0xe   : > { %s733_s29 = smul.u32 208, %s938_s16  ;;  %s632_s21 = sshll.u32 %s938_s16, 5 }
   0xf   : > { %s197_s24 = scalar_lea.vmem %s936_s4, %s632_s21 }
  0x10   : > { %s811_s6 = scalar_lea.vmem %s932_s0, %s733_s29  ;;  %690 = vmatpush1.bf16.msra.mxu0 %v689_v9 }
  0x11   : > { %v199_v12 = vld [vmem:[%s811_s6 + $0x8] sm:$0xff]  ;;  %691 = vmatprep.subr.bf16.mxu0 %v752_v3  ;;  %v198_v31 = vld [vmem:[%s811_s6] sm:$0xff]  ;;  %v201_v32 = vld [vmem:[%s811_s6 + $0x18] sm:$0xff] }
  0x12   : > { %612 = vmatprep.mubr.msk.f32.mxu0 %vm250_vm0, %v199_v12  ;;  %v200_v33 = vld [vmem:[%s811_s6 + $0x10] sm:$0xff]  ;;  %v203_v34 = vld [vmem:[%s811_s6 + $0x28] sm:$0xff]  ;;  %v202_v35 = vld [vmem:[%s811_s6 + $0x20] sm:$0xff] }
  0x13   : > { %v205_v36 = vld [vmem:[%s811_s6 + $0x38] sm:$0xff]  ;;  %v204_v37 = vld [vmem:[%s811_s6 + $0x30] sm:$0xff]  ;;  %v207_v38 = vld [vmem:[%s811_s6 + $0x48] sm:$0xff] }
  0x14   : > { %693 = vmatpush1.bf16.msra.mxu0 %v692_v13  ;;  %v206_v39 = vld [vmem:[%s811_s6 + $0x40] sm:$0xff]  ;;  %v209_v40 = vld [vmem:[%s811_s6 + $0x58] sm:$0xff]  ;;  %v208_v41 = vld [vmem:[%s811_s6 + $0x50] sm:$0xff] }
  0x15   : > { %694 = vmatprep.subr.bf16.mxu0 %v752_v3  ;;  %v211_v42 = vld [vmem:[%s811_s6 + $0x68] sm:$0xff]  ;;  %v210_v43 = vld [vmem:[%s811_s6 + $0x60] sm:$0xff]  ;;  %v213_v44 = vld [vmem:[%s811_s6 + $0x78] sm:$0xff] }
  0x16   : > { %v212_v45 = vld [vmem:[%s811_s6 + $0x70] sm:$0xff]  ;;  %v215_v46 = vld [vmem:[%s811_s6 + $0x88] sm:$0xff]  ;;  %v214_v47 = vld [vmem:[%s811_s6 + $0x80] sm:$0xff] }
  0x17   : > { %v217_v48 = vld [vmem:[%s811_s6 + $0x98] sm:$0xff]  ;;  %v216_v49 = vld [vmem:[%s811_s6 + $0x90] sm:$0xff]  ;;  %v219_v50 = vld [vmem:[%s811_s6 + $0xa8] sm:$0xff] }
  0x18   : > { %696 = vmatpush1.bf16.msra.mxu0 %v695_v16  ;;  %v218_v51 = vld [vmem:[%s811_s6 + $0xa0] sm:$0xff]  ;;  %v221_v52 = vld [vmem:[%s811_s6 + $0xb8] sm:$0xff]  ;;  %v220_v53 = vld [vmem:[%s811_s6 + $0xb0] sm:$0xff] }
  0x19   : > { %697 = vmatprep.subr.bf16.mxu0 %v752_v3  ;;  %v223_v54 = vld [vmem:[%s811_s6 + $0xc8] sm:$0xf]  ;;  %v222_v55 = vld [vmem:[%s811_s6 + $0xc0] sm:$0xf] }
  0x1c   : > { %699 = vmatpush1.bf16.msra.mxu0 %v698_v19 }
  0x1d   : > { %700 = vmatprep.subr.bf16.mxu0 %v752_v3 }
  0x20   : > { %702 = vmatpush1.bf16.msra.mxu0 %v701_v22 }
  0x21   : > { %703 = vmatprep.subr.bf16.mxu0 %v752_v3 }
  0x24   : > { %705 = vmatpush1.bf16.msra.mxu0 %v704_v25 }
  0x25   : > { %706 = vmatprep.subr.bf16.mxu0 %v752_v3 }
  0x28   : > { %708 = vmatpush1.bf16.msra.mxu0 %v707_v28 }
  0x29   : > { %330 = vmatprep.subr.mxu0 %v753_v29 }
  0x2c   : > { %611 = vmatpush1.msk.msra.mxu0 %vm290_vm1, %v242_v30 }
  0x2d   : > { %359 = vmatmul.mubr.f32.vlgmr.msra.gmra.mrb[0].mxu0 %v198_v31 }
  0x2e   : > { %613 = vmatprep.mubr.msk.f32.mxu0 %vm250_vm0, %v201_v32 }
  0x31   : > { %364 = vmatmul.mubr.f32.gmra.mrb[2].mxu0 %v200_v33 }
  0x32   : > { %614 = vmatprep.mubr.msk.f32.mxu0 %vm250_vm0, %v203_v34 }
  0x35   : > { %369 = vmatmul.mubr.f32.gmra.mrb[4].mxu0 %v202_v35 }
  0x36   : > { %615 = vmatprep.mubr.msk.f32.mxu0 %vm250_vm0, %v205_v36 }
  0x39   : > { %374 = vmatmul.mubr.f32.gmra.mrb[6].mxu0 %v204_v37 }
  0x3a   : > { %616 = vmatprep.mubr.msk.f32.mxu0 %vm250_vm0, %v207_v38 }
  0x3d   : > { %379 = vmatmul.mubr.f32.gmra.mrb[8].mxu0 %v206_v39 }
  0x3e   : > { %617 = vmatprep.mubr.msk.f32.mxu0 %vm250_vm0, %v209_v40 }
  0x41   : > { %384 = vmatmul.mubr.f32.gmra.mrb[10].mxu0 %v208_v41 }
  0x42   : > { %618 = vmatprep.mubr.msk.f32.mxu0 %vm250_vm0, %v211_v42 }
  0x45   : > { %389 = vmatmul.mubr.f32.gmra.mrb[12].mxu0 %v210_v43 }
  0x46   : > { %619 = vmatprep.mubr.msk.f32.mxu0 %vm250_vm0, %v213_v44 }
  0x49   : > { %394 = vmatmul.mubr.f32.gmra.mrb[14].mxu0 %v212_v45 }
  0x4a   : > { %620 = vmatprep.mubr.msk.f32.mxu0 %vm250_vm0, %v215_v46 }
  0x4d   : > { %399 = vmatmul.mubr.f32.gmra.mrb[16].mxu0 %v214_v47 }
  0x4e   : > { %621 = vmatprep.mubr.msk.f32.mxu0 %vm250_vm0, %v217_v48 }
  0x51   : > { %404 = vmatmul.mubr.f32.gmra.mrb[18].mxu0 %v216_v49 }
  0x52   : > { %622 = vmatprep.mubr.msk.f32.mxu0 %vm250_vm0, %v219_v50 }
  0x55   : > { %409 = vmatmul.mubr.f32.gmra.mrb[20].mxu0 %v218_v51 }
  0x56   : > { %623 = vmatprep.mubr.msk.f32.mxu0 %vm250_vm0, %v221_v52  ;;  %v438_v52 = vld [vmem:[%s935_s3 + $0x8] sm:$0xff] }
  0x59   : > { %414 = vmatmul.mubr.f32.gmra.mrb[22].mxu0 %v220_v53  ;;  %v439_v53 = vld [vmem:[%s935_s3 + $0x10] sm:$0xff] }
  0x5a   : > { %624 = vmatprep.mubr.msk.f32.mxu0 %vm250_vm0, %v223_v54  ;;  %v440_v54 = vld [vmem:[%s935_s3 + $0x18] sm:$0x1] }
  0x5d   : > { %419 = vmatmul.mubr.f32.gmra.mrb[24].mxu0 %v222_v55 }
 0x100   : > { %v360_v58 = vpop.f32.mrb[0].mxu0 }
 0x101   : > { %v362_v59 = vpop.f32.mrb[1].mxu0  ;;  %v361_v60 = vadd.f32 %v898_v57, %v360_v58 }
 0x103   : > { %v424_v0 = vmax.f32 %v361_v60, 0.0 }
 0x104   : > { %v365_v61 = vpop.f32.mrb[2].mxu0 }
 0x105   : > { %v366_v62 = vadd.f32 %v898_v57, %v365_v61  ;;  %v367_v63 = vpop.f32.mrb[3].mxu0 }
 0x107   : > { %v425_v1 = vmax.f32 %v366_v62, 0.0 }
 0x108   : > { %v370_v2 = vpop.f32.mrb[4].mxu0 }
 0x109   : > { %v372_v3 = vpop.f32.mrb[5].mxu0  ;;  %v709_v4 = vpack.c.bf16 %v425_v1, %v424_v0  ;;  %v371_v5 = vadd.f32 %v898_v57, %v370_v2 }
 0x10b   : > { %710 = vmatprep.subr.bf16.mxu1 %v709_v4  ;;  %v426_v9 = vmax.f32 %v371_v5, 0.0 }
 0x10c   : > { %v375_v6 = vpop.f32.mrb[6].mxu0  ;;  %712 = vmatpush3.bf16.msra.mxu1 %v709_v4 }
 0x10d   : > { %v376_v7 = vadd.f32 %v898_v57, %v375_v6  ;;  %v377_v8 = vpop.f32.mrb[7].mxu0 }
 0x10f   : > { %v427_v10 = vmax.f32 %v376_v7, 0.0 }
 0x110   : > { %v380_v11 = vpop.f32.mrb[8].mxu0 }
 0x111   : > { %v713_v12 = vpack.c.bf16 %v427_v10, %v426_v9  ;;  %v382_v13 = vpop.f32.mrb[9].mxu0  ;;  %v381_v14 = vadd.f32 %v898_v57, %v380_v11 }
 0x113   : > { %714 = vmatprep.subr.bf16.mxu1 %v713_v12  ;;  %v428_v18 = vmax.f32 %v381_v14, 0.0 }
 0x114   : > { %v385_v15 = vpop.f32.mrb[10].mxu0  ;;  %716 = vmatpush3.bf16.msra.mxu1 %v713_v12 }
 0x115   : > { %v386_v16 = vadd.f32 %v898_v57, %v385_v15  ;;  %v387_v17 = vpop.f32.mrb[11].mxu0 }
 0x117   : > { %v429_v19 = vmax.f32 %v386_v16, 0.0 }
 0x118   : > { %v390_v20 = vpop.f32.mrb[12].mxu0 }
 0x119   : > { %v717_v21 = vpack.c.bf16 %v429_v19, %v428_v18  ;;  %v392_v22 = vpop.f32.mrb[13].mxu0  ;;  %v391_v23 = vadd.f32 %v898_v57, %v390_v20 }
 0x11b   : > { %718 = vmatprep.subr.bf16.mxu1 %v717_v21  ;;  %v430_v27 = vmax.f32 %v391_v23, 0.0 }
 0x11c   : > { %v395_v24 = vpop.f32.mrb[14].mxu0  ;;  %720 = vmatpush3.bf16.msra.mxu1 %v717_v21 }
 0x11d   : > { %v396_v25 = vadd.f32 %v898_v57, %v395_v24  ;;  %v397_v26 = vpop.f32.mrb[15].mxu0 }
 0x11f   : > { %v431_v28 = vmax.f32 %v396_v25, 0.0 }
 0x120   : > { %v400_v29 = vpop.f32.mrb[16].mxu0 }
 0x121   : > { %v721_v30 = vpack.c.bf16 %v431_v28, %v430_v27  ;;  %v402_v31 = vpop.f32.mrb[17].mxu0  ;;  %v401_v32 = vadd.f32 %v898_v57, %v400_v29 }
 0x123   : > { %722 = vmatprep.subr.bf16.mxu1 %v721_v30  ;;  %v432_v36 = vmax.f32 %v401_v32, 0.0 }
 0x124   : > { %v405_v33 = vpop.f32.mrb[18].mxu0  ;;  %724 = vmatpush3.bf16.msra.mxu1 %v721_v30 }
 0x125   : > { %v406_v34 = vadd.f32 %v898_v57, %v405_v33  ;;  %v407_v35 = vpop.f32.mrb[19].mxu0 }
 0x127   : > { %v433_v37 = vmax.f32 %v406_v34, 0.0 }
 0x128   : > { %v410_v38 = vpop.f32.mrb[20].mxu0 }
 0x129   : > { %v725_v39 = vpack.c.bf16 %v433_v37, %v432_v36  ;;  %v412_v40 = vpop.f32.mrb[21].mxu0  ;;  %v411_v41 = vadd.f32 %v898_v57, %v410_v38 }
 0x12b   : > { %726 = vmatprep.subr.bf16.mxu1 %v725_v39  ;;  %v434_v45 = vmax.f32 %v411_v41, 0.0 }
 0x12c   : > { %v415_v42 = vpop.f32.mrb[22].mxu0  ;;  %728 = vmatpush3.bf16.msra.mxu1 %v725_v39 }
 0x12d   : > { %v416_v43 = vadd.f32 %v898_v57, %v415_v42  ;;  %v417_v44 = vpop.f32.mrb[23].mxu0 }
 0x12f   : > { %v435_v46 = vmax.f32 %v416_v43, 0.0 }
 0x130   : > { %v420_v47 = vpop.f32.mrb[24].mxu0 }
 0x131   : > { %v729_v48 = vpack.c.bf16 %v435_v46, %v434_v45  ;;  %v421_v49 = vadd.f32 %v898_v57, %v420_v47  ;;  %v422_v50 = vpop.f32.mrb[25].mxu0 }
 0x133   : > { %v436_v51 = vmax.f32 %v421_v49, 0.0  ;;  %730 = vmatprep.subr.bf16.mxu1 %v729_v48 }
 0x134   : > { %732 = vmatpush3.bf16.msra.mxu1 %v729_v48 }
 0x135   : > { %674 = vmatprep.subr.msk.mxu1 %vm454_vm3, %v436_v51 }
 0x138   : > { %675 = vmatpush3.msk.msra.mxu1 %vm454_vm3, %v436_v51 }
 0x139   : > { %677 = vmatmul.mubr.msk.f32.vlgmr.msra.gmra.mrb[0].mxu1 %vm441_vm2, %v438_v52 }
 0x13a   : > { %679 = vmatprep.mubr.msk.f32.mxu1 %vm441_vm2, %v439_v53 }
 0x13d   : > { %680 = vmatmul.mubr.msk.f32.gmra.mrb[2].mxu1 %vm441_vm2, %v440_v54 }
 0x20c   : > { %v678_v55 = vpop.f32.mrb[0].mxu1 }
 0x20d   : > { %544 = vst [vmem:[%s197_s24 + $0x8] sm:$0xff] %v678_v55  ;;  %v524_v56 = vpop.f32.mrb[1].mxu1 }
 0x20e   : > { %543 = vst [vmem:[%s197_s24] sm:$0xff] %v524_v56 }
 0x210   : > { %v681_v57 = vpop.f32.mrb[2].mxu1 }
 0x211   : > { %546 = vst [vmem:[%s197_s24 + $0x18] sm:$0x1] %v681_v57  ;;  %v534_v58 = vpop.f32.mrb[3].mxu1 }
 0x212   : > { %545 = vst [vmem:[%s197_s24 + $0x10] sm:$0xff] %v534_v58 }
 0x213 PF: > { %s14_s15 = sadd.s32 1, %s750_s15  }
 0x214   : > { %p11_p4 = scmp.ge.s32.totalorder %s14_s15, 4  }
 0x216   :  { %13 = sbr.rel (!%p11_p4) target bundleno = 1 (0x1), region = 66 }

// kernel: lenet_forward.5
= control target key start
LH: loop header
LB: loop body
LE: loop exit
PB: predicated region body
PF: predicated region fallthrough
CT: control target
= control target key end

     0   :  { %v732_v4 = vmov 0.0|0.0   ;;  %v733_v26 = vmov 1983009808   ;;  %v90_v28 = vlaneseq  ;;  %vm106_vm0 = vcmask 130048   ;;  %s1072_s0 = inlined_call_operand.vmem [shape: f32[2,400], index: 0, kind: input, shape index: {}]   ;;  %s1073_s1 = inlined_call_operand.vmem [shape: f32[400,128], index: 1, kind: input, shape index: {}]   ;;  %s1074_s2 = inlined_call_operand.vmem [shape: f32[1,128], index: 2, kind: input, shape index: {}]   ;;  %s1075_s3 = inlined_call_operand.vmem [shape: f32[128,128], index: 3, kind: input, shape index: {}]   ;;  %s1076_s4 = inlined_call_operand.vmem [shape: f32[1,128], index: 4, kind: input, shape index: {}]   ;;  %s1077_s5 = inlined_call_operand.vmem [shape: f32[128,128], index: 5, kind: input, shape index: {}]   ;;  %s1078_s6 = inlined_call_operand.vmem [shape: f32[1,128], index: 6, kind: input, shape index: {}]   ;;  %s1079_s7 = inlined_call_operand.hbm [shape: f32[2,128], index: 7, kind: output, shape index: {}]  }
   0x1   :  { %v44_v0 = vld [vmem:[%s1073_s1 + $0x80] sm:$0xff]  ;;  %v45_v1 = vld [vmem:[%s1073_s1 + $0x88] sm:$0xff]  ;;  %627 = vmatprep.subr.bf16.mxu1 %v732_v4  ;;  %v46_v10 = vld [vmem:[%s1073_s1 + $0x90] sm:$0xff]  ;;  %v88_v27 = vunpack.c.l.s4 %v733_v26 }
   0x2   :  { %v28_v2 = vld [vmem:[%s1073_s1] sm:$0xff]  ;;  %v595_v3 = vpack.c.bf16 %v45_v1, %v44_v0  ;;  %v29_v5 = vld [vmem:[%s1073_s1 + $0x8] sm:$0xff]  ;;  %v47_v11 = vld [vmem:[%s1073_s1 + $0x98] sm:$0xff]  ;;  %v91_v39 = vshrl.u32 %v90_v28, 7 }
   0x3   :  { %v60_v6 = vld [vmem:[%s1073_s1 + $0x100] sm:$0xff]  ;;  %v61_v7 = vld [vmem:[%s1073_s1 + $0x108] sm:$0xff]  ;;  %v597_v8 = vpack.c.bf16 %v29_v5, %v28_v2  ;;  %v30_v12 = vld [vmem:[%s1073_s1 + $0x10] sm:$0xff]  ;;  %v599_v13 = vpack.c.bf16 %v47_v11, %v46_v10  ;;  %v89_v38 = vunpack.c.0.s8 %v88_v27 }
   0x4   :  { %v628_v9 = vpack.c.bf16 %v61_v7, %v60_v6  ;;  %596 = vmatprep.subr.bf16.mxu0 %v595_v3  ;;  %v31_v14 = vld [vmem:[%s1073_s1 + $0x18] sm:$0xff]  ;;  %v62_v15 = vld [vmem:[%s1073_s1 + $0x110] sm:$0xff]  ;;  %v48_v19 = vld [vmem:[%s1073_s1 + $0xa0] sm:$0xff] }
   0x5   :  { %v63_v16 = vld [vmem:[%s1073_s1 + $0x118] sm:$0xff]  ;;  %598 = vmatpush3.bf16.msra.mxu0 %v597_v8  ;;  %v601_v17 = vpack.c.bf16 %v31_v14, %v30_v12  ;;  %v49_v20 = vld [vmem:[%s1073_s1 + $0xa8] sm:$0xff]  ;;  %v32_v21 = vld [vmem:[%s1073_s1 + $0x20] sm:$0xff]  ;;  %v92_v49 = vsub.s32 %v89_v38, %v91_v39 }
   0x6   :  { %629 = vmatpush1.bf16.msra.mxu1 %v628_v9  ;;  %v631_v18 = vpack.c.bf16 %v63_v16, %v62_v15  ;;  %600 = vmatprep.subr.bf16.mxu0 %v599_v13  ;;  %v603_v22 = vpack.c.bf16 %v49_v20, %v48_v19  ;;  %v33_v23 = vld [vmem:[%s1073_s1 + $0x28] sm:$0xff]  ;;  %v64_v24 = vld [vmem:[%s1073_s1 + $0x120] sm:$0xff]  ;;  %v50_v29 = vld [vmem:[%s1073_s1 + $0xb0] sm:$0xff] }
   0x7   :  { %630 = vmatprep.subr.bf16.mxu1 %v732_v4  ;;  %v65_v25 = vld [vmem:[%s1073_s1 + $0x128] sm:$0xff]  ;;  %v51_v30 = vld [vmem:[%s1073_s1 + $0xb8] sm:$0xff]  ;;  %v605_v31 = vpack.c.bf16 %v33_v23, %v32_v21  ;;  %v34_v33 = vld [vmem:[%s1073_s1 + $0x30] sm:$0xff] }
   0x8   :  { %v634_v32 = vpack.c.bf16 %v65_v25, %v64_v24  ;;  %v607_v34 = vpack.c.bf16 %v51_v30, %v50_v29  ;;  %v35_v35 = vld [vmem:[%s1073_s1 + $0x38] sm:$0xff]  ;;  %v66_v36 = vld [vmem:[%s1073_s1 + $0x130] sm:$0xff]  ;;  %v52_v40 = vld [vmem:[%s1073_s1 + $0xc0] sm:$0xff] }
   0x9   :  { %602 = vmatpush3.bf16.msra.mxu0 %v601_v17  ;;  %v67_v37 = vld [vmem:[%s1073_s1 + $0x138] sm:$0xff]  ;;  %v53_v41 = vld [vmem:[%s1073_s1 + $0xc8] sm:$0xff]  ;;  %v609_v42 = vpack.c.bf16 %v35_v35, %v34_v33  ;;  %v36_v44 = vld [vmem:[%s1073_s1 + $0x40] sm:$0xff] }
   0xa   :  { %632 = vmatpush1.bf16.msra.mxu1 %v631_v18  ;;  %604 = vmatprep.subr.bf16.mxu0 %v603_v22  ;;  %v637_v43 = vpack.c.bf16 %v67_v37, %v66_v36  ;;  %v611_v45 = vpack.c.bf16 %v53_v41, %v52_v40  ;;  %v37_v46 = vld [vmem:[%s1073_s1 + $0x48] sm:$0xff]  ;;  %v68_v47 = vld [vmem:[%s1073_s1 + $0x140] sm:$0xff]  ;;  %v54_v50 = vld [vmem:[%s1073_s1 + $0xd0] sm:$0xff] }
   0xb   :  { %633 = vmatprep.subr.bf16.mxu1 %v732_v4  ;;  %v69_v48 = vld [vmem:[%s1073_s1 + $0x148] sm:$0xff]  ;;  %v55_v51 = vld [vmem:[%s1073_s1 + $0xd8] sm:$0xff]  ;;  %v613_v52 = vpack.c.bf16 %v37_v46, %v36_v44  ;;  %v38_v54 = vld [vmem:[%s1073_s1 + $0x50] sm:$0xff] }
   0xc   :  { %v640_v53 = vpack.c.bf16 %v69_v48, %v68_v47  ;;  %v27_v55 = vld [vmem:[%s1072_s0] sm:$0xff]  ;;  %v615_v56 = vpack.c.bf16 %v55_v51, %v54_v50  ;;  %v39_v57 = vld [vmem:[%s1073_s1 + $0x58] sm:$0xff]  ;;  %v70_v58 = vld [vmem:[%s1073_s1 + $0x150] sm:$0xff] }
   0xd   :  { %606 = vmatpush3.bf16.msra.mxu0 %v605_v31  ;;  %v71_v59 = vld [vmem:[%s1073_s1 + $0x158] sm:$0xff]  ;;  %v86_v60 = vcombine.high %v27_v55, %v27_v55  ;;  %v93_v61 = vrot.slane %v27_v55, %v92_v49  ;;  %v56_v62 = vld [vmem:[%s1073_s1 + $0xe0] sm:$0xff]  ;;  %v57_v63 = vld [vmem:[%s1073_s1 + $0xe8] sm:$0xff]  ;;  %v617_v2 = vpack.c.bf16 %v39_v57, %v38_v54 }
   0xe   :  { %635 = vmatpush1.bf16.msra.mxu1 %v634_v32  ;;  %608 = vmatprep.subr.bf16.mxu0 %v607_v34  ;;  %v643_v3 = vpack.c.bf16 %v71_v59, %v70_v58  ;;  %v40_v5 = vld [vmem:[%s1073_s1 + $0x60] sm:$0xff]  ;;  %v41_v6 = vld [vmem:[%s1073_s1 + $0x68] sm:$0xff]  ;;  %v619_v7 = vpack.c.bf16 %v57_v63, %v56_v62 }
   0xf   :  { %636 = vmatprep.subr.bf16.mxu1 %v732_v4  ;;  %v101_v0 = vcombine.high %v93_v61, %v93_v61  ;;  %v100_v1 = vrot.slane %v86_v60, %v92_v49  ;;  %v72_v8 = vld [vmem:[%s1073_s1 + $0x160] sm:$0xff]  ;;  %v73_v9 = vld [vmem:[%s1073_s1 + $0x168] sm:$0xff] }
  0x11   :  { %610 = vmatpush3.bf16.msra.mxu0 %v609_v42  ;;  %v102_v10 = vcombine.high %v100_v1, %v100_v1 }
  0x12   :  { %638 = vmatpush1.bf16.msra.mxu1 %v637_v43  ;;  %612 = vmatprep.subr.bf16.mxu0 %v611_v45 }
  0x13   :  { %639 = vmatprep.subr.bf16.mxu1 %v732_v4 }
  0x15   :  { %614 = vmatpush3.bf16.msra.mxu0 %v613_v52 }
  0x16   :  { %641 = vmatpush1.bf16.msra.mxu1 %v640_v53  ;;  %616 = vmatprep.subr.bf16.mxu0 %v615_v56 }
  0x17   :  { %642 = vmatprep.subr.bf16.mxu1 %v732_v4 }
  0x18   :  { %12 = vsyncpa [#allocation3], 0  ;;  %v58_v11 = vld [vmem:[%s1073_s1 + $0xf0] sm:$0xff]  ;;  %v59_v12 = vld [vmem:[%s1073_s1 + $0xf8] sm:$0xff]  ;;  %173 = vmatprep.mubr.f32.mxu0 %v101_v0  ;;  %453 = vmatprep.mubr.msk.f32.mxu1 %vm106_vm0, %v102_v10  ;;  %v621_v13 = vpack.c.bf16 %v41_v6, %v40_v5  ;;  %v646_v14 = vpack.c.bf16 %v73_v9, %v72_v8  ;;  %vm734_vm1 = vmmov 0   ;;  %v735_v49 = vmov 0.0  }
  0x19   :  { %618 = vmatpush3.bf16.msra.mxu0 %v617_v2  ;;  %v42_v15 = vld [vmem:[%s1073_s1 + $0x70] sm:$0xff]  ;;  %v623_v16 = vpack.c.bf16 %v59_v12, %v58_v11  ;;  %v43_v17 = vld [vmem:[%s1073_s1 + $0x78] sm:$0xff]  ;;  %v76_v22 = vld [vmem:[%s1073_s1 + $0x180] sm:$0xff]  ;;  %s736_s25 = smov [#allocation2]  }
  0x1a   :  { %644 = vmatpush1.bf16.msra.mxu1 %v643_v3  ;;  %620 = vmatprep.subr.bf16.mxu0 %v619_v7  ;;  %v74_v18 = vld [vmem:[%s1073_s1 + $0x170] sm:$0xff]  ;;  %v75_v19 = vld [vmem:[%s1073_s1 + $0x178] sm:$0xff]  ;;  %v625_v20 = vpack.c.bf16 %v43_v17, %v42_v15  ;;  %v77_v23 = vld [vmem:[%s1073_s1 + $0x188] sm:$0xff]  ;;  %s444_s26 = sshll.u32 %s736_s25, 4  ;;  %s445_s26 = int_to_ptr.vmem [resolvable:$true] %s444_s26 }
  0x1b   :  { %645 = vmatprep.subr.bf16.mxu1 %v732_v4  ;;  %v649_v21 = vpack.c.bf16 %v75_v19, %v74_v18  ;;  %v250_v24 = vld [vmem:[%s1075_s3] sm:$0xff]  ;;  %v251_v25 = vld [vmem:[%s1075_s3 + $0x8] sm:$0xff]  ;;  %v652_v26 = vpack.c.bf16 %v77_v23, %v76_v22  ;;  %v252_v28 = vld [vmem:[%s1075_s3 + $0x10] sm:$0xff]  ;;  %p713_p1 = scmp.lt.s32.totalorder %s445_s26, %s445_s26 }
  0x1c   :  { %v655_v27 = vpack.c.bf16 %v251_v25, %v250_v24  ;;  %v253_v29 = vld [vmem:[%s1075_s3 + $0x18] sm:$0xff]  ;;  %v254_v31 = vld [vmem:[%s1075_s3 + $0x20] sm:$0xff]  ;;  %v255_v32 = vld [vmem:[%s1075_s3 + $0x28] sm:$0xff] }
  0x1d   :  { %622 = vmatpush3.bf16.msra.mxu0 %v621_v13  ;;  %v658_v30 = vpack.c.bf16 %v253_v29, %v252_v28  ;;  %v661_v33 = vpack.c.bf16 %v255_v32, %v254_v31  ;;  %v256_v34 = vld [vmem:[%s1075_s3 + $0x30] sm:$0xff]  ;;  %v257_v35 = vld [vmem:[%s1075_s3 + $0x38] sm:$0xff]  ;;  %v258_v37 = vld [vmem:[%s1075_s3 + $0x40] sm:$0xff] }
  0x1e   :  { %647 = vmatpush1.bf16.msra.mxu1 %v646_v14  ;;  %624 = vmatprep.subr.bf16.mxu0 %v623_v16  ;;  %v664_v36 = vpack.c.bf16 %v257_v35, %v256_v34  ;;  %v259_v38 = vld [vmem:[%s1075_s3 + $0x48] sm:$0xff]  ;;  %v260_v40 = vld [vmem:[%s1075_s3 + $0x50] sm:$0xff]  ;;  %v261_v41 = vld [vmem:[%s1075_s3 + $0x58] sm:$0xff] }
  0x1f   :  { %648 = vmatprep.subr.bf16.mxu1 %v732_v4  ;;  %v667_v39 = vpack.c.bf16 %v259_v38, %v258_v37  ;;  %v670_v42 = vpack.c.bf16 %v261_v41, %v260_v40  ;;  %v262_v43 = vld [vmem:[%s1075_s3 + $0x60] sm:$0xff]  ;;  %v263_v44 = vld [vmem:[%s1075_s3 + $0x68] sm:$0xff]  ;;  %v264_v46 = vld [vmem:[%s1075_s3 + $0x70] sm:$0xff] }
  0x20   :  { %v673_v45 = vpack.c.bf16 %v263_v44, %v262_v43  ;;  %v265_v47 = vld [vmem:[%s1075_s3 + $0x78] sm:$0xff]  ;;  %v344_v50 = vld [vmem:[%s1077_s5] sm:$0xff]  ;;  %v345_v51 = vld [vmem:[%s1077_s5 + $0x8] sm:$0xff] }
  0x21   :  { %626 = vmatpush3.bf16.msra.mxu0 %v625_v20  ;;  %v676_v48 = vpack.c.bf16 %v265_v47, %v264_v46  ;;  %v346_v52 = vld [vmem:[%s1077_s5 + $0x10] sm:$0xff]  ;;  %v679_v53 = vpack.c.bf16 %v345_v51, %v344_v50  ;;  %v347_v54 = vld [vmem:[%s1077_s5 + $0x18] sm:$0xff]  ;;  %v348_v56 = vld [vmem:[%s1077_s5 + $0x20] sm:$0xff] }
  0x22   :  { %650 = vmatpush1.bf16.msra.mxu1 %v649_v21  ;;  %654 = vmatprep.subr.bf16.mxu0 %v732_v4  ;;  %v682_v55 = vpack.c.bf16 %v347_v54, %v346_v52  ;;  %v349_v57 = vld [vmem:[%s1077_s5 + $0x28] sm:$0xff]  ;;  %v350_v59 = vld [vmem:[%s1077_s5 + $0x30] sm:$0xff]  ;;  %v351_v60 = vld [vmem:[%s1077_s5 + $0x38] sm:$0xff] }
  0x23   :  { %651 = vmatprep.subr.bf16.mxu1 %v732_v4  ;;  %v685_v58 = vpack.c.bf16 %v349_v57, %v348_v56  ;;  %v352_v62 = vld [vmem:[%s1077_s5 + $0x40] sm:$0xff]  ;;  %v353_v63 = vld [vmem:[%s1077_s5 + $0x48] sm:$0xff]  ;;  %v355_v2 = vld [vmem:[%s1077_s5 + $0x58] sm:$0xff] }
  0x24   :  { %174 = vmatmul.mubr.f32.vlgmr.msra.gmra.mrb[0].mxu0 %v93_v61  ;;  %v688_v61 = vpack.c.bf16 %v351_v60, %v350_v59  ;;  %v691_v0 = vpack.c.bf16 %v353_v63, %v352_v62  ;;  %v356_v5 = vld [vmem:[%s1077_s5 + $0x60] sm:$0xff]  ;;  %v357_v6 = vld [vmem:[%s1077_s5 + $0x68] sm:$0xff]  ;;  %v358_v17 = vld [vmem:[%s1077_s5 + $0x70] sm:$0xff] }
  0x25   :  { %656 = vmatpush3.bf16.msra.mxu0 %v655_v27  ;;  %557 = vmatprep.mubr.msk.f32.mxu0 %vm734_vm1, %v735_v49  ;;  %v697_v7 = vpack.c.bf16 %v357_v6, %v356_v5  ;;  %v452_v10 = vld [vmem:[%s1074_s2] ss:$0 sm:$0xff] }
  0x26   :  { %653 = vmatpush1.bf16.msra.mxu1 %v652_v26  ;;  %657 = vmatprep.subr.bf16.mxu0 %v732_v4  ;;  %v454_v19 = vld [vmem:[%s1076_s4] ss:$0 sm:$0xff] }
  0x27   :  { %678 = vmatprep.subr.bf16.mxu1 %v732_v4  ;;  %v455_v24 = vld [vmem:[%s1078_s6] ss:$0 sm:$0xff] }
  0x29   :  { %244 = vmatmul.mubr.f32.vlgmr.msra.gmra.mrb[0].mxu1 %v100_v1  ;;  %659 = vmatpush3.bf16.msra.mxu0 %v658_v30  ;;  %v354_v1 = vld [vmem:[%s1077_s5 + $0x50] sm:$0xff] }
  0x2a   :  { %660 = vmatprep.subr.bf16.mxu0 %v732_v4  ;;  %592 = vmatprep.mubr.msk.f32.mxu1 %vm734_vm1, %v735_v49  ;;  %v694_v3 = vpack.c.bf16 %v355_v2, %v354_v1 }
  0x2b   :  { %680 = vmatpush3.bf16.msra.mxu1 %v679_v53 }
  0x2c   :  { %681 = vmatprep.subr.bf16.mxu1 %v732_v4 }
  0x2d   :  { %662 = vmatpush3.bf16.msra.mxu0 %v661_v33 }
  0x2e   :  { %663 = vmatprep.subr.bf16.mxu0 %v732_v4 }
  0x2f   :  { %683 = vmatpush3.bf16.msra.mxu1 %v682_v55 }
  0x30   :  { %684 = vmatprep.subr.bf16.mxu1 %v732_v4 }
  0x31   :  { %665 = vmatpush3.bf16.msra.mxu0 %v664_v36 }
  0x32   :  { %666 = vmatprep.subr.bf16.mxu0 %v732_v4 }
  0x33   :  { %686 = vmatpush3.bf16.msra.mxu1 %v685_v58 }
  0x34   :  { %687 = vmatprep.subr.bf16.mxu1 %v732_v4 }
  0x35   :  { %668 = vmatpush3.bf16.msra.mxu0 %v667_v39 }
  0x36   :  { %669 = vmatprep.subr.bf16.mxu0 %v732_v4 }
  0x37   :  { %689 = vmatpush3.bf16.msra.mxu1 %v688_v61 }
  0x38   :  { %690 = vmatprep.subr.bf16.mxu1 %v732_v4 }
  0x39   :  { %671 = vmatpush3.bf16.msra.mxu0 %v670_v42 }
  0x3a   :  { %672 = vmatprep.subr.bf16.mxu0 %v732_v4 }
  0x3b   :  { %692 = vmatpush3.bf16.msra.mxu1 %v691_v0 }
  0x3c   :  { %693 = vmatprep.subr.bf16.mxu1 %v732_v4 }
  0x3d   :  { %674 = vmatpush3.bf16.msra.mxu0 %v673_v45 }
  0x3e   :  { %675 = vmatprep.subr.bf16.mxu0 %v732_v4 }
  0x3f   :  { %695 = vmatpush3.bf16.msra.mxu1 %v694_v3 }
  0x40   :  { %696 = vmatprep.subr.bf16.mxu1 %v732_v4 }
  0x41   :  { %677 = vmatpush3.bf16.msra.mxu0 %v676_v48 }
  0x43   :  { %698 = vmatpush3.bf16.msra.mxu1 %v697_v7 }
  0x44   :  { %699 = vmatprep.subr.bf16.mxu1 %v732_v4  ;;  %v359_v4 = vld [vmem:[%s1077_s5 + $0x78] sm:$0xff]  ;;  %s708_s5 = scalar_lea.vmem %s445_s26, 32 }
  0x45   :  { %v700_v18 = vpack.c.bf16 %v359_v4, %v358_v17  ;;  %p709_p0 = scmp.ne.s32.totalorder %s445_s26, %s708_s5  ;;  %p714_p2 = scmp.lt.s32.totalorder %s708_s5, %s708_s5 }
  0x47   :  { %701 = vmatpush3.bf16.msra.mxu1 %v700_v18  ;;  %p715_p3 = por %p714_p2, %p713_p1 }
  0x49   :  { %p716_p4 = pnand %p715_p3, %p709_p0 }
  0xf7   :  { %v488_v8 = vpop.f32.mrb[0].mxu0 }
  0xf8   :  { %v489_v9 = vpop.f32.mrb[1].mxu0 }
  0xf9   :  { %v490_v11 = vadd.f32 %v489_v9, %v488_v8 }
  0xfb   :  { %v176_v12 = vadd.f32 %v490_v11, %v452_v10 }
  0xfc   :  { %v245_v13 = vpop.f32.mrb[0].mxu1 }
  0xfd   :  { %v247_v14 = vpop.f32.mrb[1].mxu1  ;;  %v246_v15 = vadd.f32 %v245_v13, %v176_v12 }
  0xff   :  { %v249_v16 = vmax.f32 %v246_v15, 0.0 }
 0x101   :  { %558 = vmatmul.mubr.f32.vlgmr.msra.gmra.mrb[2].mxu0 %v249_v16 }
 0x1d4   :  { %v339_v20 = vpop.f32.mrb[2].mxu0 }
 0x1d5   :  { %v340_v21 = vadd.f32 %v454_v19, %v339_v20  ;;  %v559_v22 = vpop.f32.mrb[3].mxu0 }
 0x1d7   :  { %v343_v23 = vmax.f32 %v340_v21, 0.0 }
 0x1d9   :  { %593 = vmatmul.mubr.f32.vlgmr.msra.gmra.mrb[2].mxu1 %v343_v23 }
 0x2ac   :  { %v433_v25 = vpop.f32.mrb[2].mxu1 }
 0x2ad   :  { %v434_v26 = vadd.f32 %v455_v24, %v433_v25  ;;  %v594_v27 = vpop.f32.mrb[3].mxu1 }
 0x2af   :  { %437 = vst [vmem:[#allocation2] sm:$0x3] %v434_v26 }
 0x2b0   :  { %719 = shalt.err (!%p716_p4)
}
 0x2b1   :  { %s720_s28 = scalar_lea.hbm %s1079_s7, 32 }
 0x2b2   :  { %p721_p5 = scmp.ne.s32.totalorder %s1079_s7, %s720_s28  ;;  %p724_p6 = scmp.lt.u32.totalorder %s720_s28, %s1079_s7 }
 0x2b4   :  { %p726_p7 = pnand %p724_p6, %p721_p5 }
 0x2b6   :  { %729 = shalt.err (!%p726_p7)
}
 0x2b7   :  { %447 = dma.vmem_to_hbm [thread:$0]  %s445_s26, 32, %s1079_s7, [#allocation3]  }
 0x2b8   :  { %730 = dma.done.wait [#allocation3], 32  }
 0x2b9   :  { %731 = vsyncadd [#allocation3], 4294967264 }
 0x2ba   :  { %451 = vsyncpa [#allocation3], 1 }

</bundles_post_ra>
